<compile_context>
chip_gen: v5e
topology: v5e:2x2
jax: 0.10.0
libtpu: 0.0.40
codegen_flags: <defaults>
</compile_context>

<pallas_src>
import jax
import jax.numpy as jnp
from jax.experimental import pallas as pl
from jax.experimental.pallas import tpu as pltpu

EPS = 1e-6
HIGHEST = jax.lax.Precision.HIGHEST
F32 = jnp.float32
BF16 = jnp.bfloat16


# ---------------------------------------------------------------------------
# Hardware-aware defaults (VMEM budget, bf16-VPU capability).
# ---------------------------------------------------------------------------
def _device_kind():
    try:
        return jax.devices()[0].device_kind.lower()
    except Exception:
        return ""


def _vmem_capacity_bytes():
    kind = _device_kind()
    cap = None
    try:
        cap = int(pltpu.get_tpu_info().vmem_capacity_bytes)
        if cap <= 0:
            cap = None
    except Exception:
        cap = None
    if cap is None:
        if "v7" in kind:
            cap = 64 << 20
        elif "v2" in kind or "v3" in kind:
            cap = 16 << 20
        else:
            cap = 128 << 20
    if "v7" in kind:                  # 64 MiB per TensorCore on v7x, never ask for more
        cap = min(cap, 64 << 20)
    return cap


def _vmem_limit_bytes():
    # ~75% of physical, capped at 100 MiB: ~96 MiB on v5e/v6e, ~48 MiB on v7x.
    return min(int(_vmem_capacity_bytes() * 3 // 4), 100 << 20)


def _has_bf16_vpu():
    kind = _device_kind()
    return not any(g in kind for g in ("v2", "v3", "v4", "v5"))


# ---------------------------------------------------------------------------
# Small in-kernel helpers.
# ---------------------------------------------------------------------------
def _norm(x):
    # LayerNorm2d statistics (per-pixel over the channel/lane axis); the affine
    # (weight, bias) is folded into the following 1x1 conv outside the kernel.
    mu = jnp.mean(x, axis=-1, keepdims=True)
    var = jnp.mean((x - mu) ** 2, axis=-1, keepdims=True)
    return (x - mu) * jax.lax.rsqrt(var + EPS)        # rsqrt -> EUP slot


def _mm(a, b_bf16):
    # bf16 MXU matmul with f32 accumulation (weights pre-cast to bf16 outside).
    return jnp.dot(a.astype(BF16), b_bf16, preferred_element_type=F32)


# ---------------------------------------------------------------------------
# Pass 1: norm1 -> conv1 (1x1) -> conv2 (3x3 depthwise) -> SimpleGate -> x1,
# plus the SCA global-average-pool + Linear as a cross-tile reduction.
# ---------------------------------------------------------------------------
def _make_pass1_kernel(H, W, C, TH, ew):
    C2 = 2 * C
    NI = TH * W              # interior flattened rows of the tile
    N = NI + 2 * W           # halo-extended flattened rows
    inv_hw = 1.0 / (H * W)

    def kernel(inp_ref, top_ref, bot_ref, rows2c_ref, scab_ref,
               w1_ref, w2_ref, scaw_ref, x1_ref, sca_ref):
        t = pl.program_id(1)
        nt = pl.num_programs(1)

        b1 = rows2c_ref[0:1, :]          # LN1 affine folded: b1' = n1b @ W1 + b1
        b2 = rows2c_ref[1:2, :]

        # ---- norm1 + conv1 (1x1) over the halo-extended tile: ONE matmul ----
        inp_ext = jnp.concatenate(
            [top_ref[...], inp_ref[...].reshape(NI, C), bot_ref[...]], axis=0)
        x_ext = _mm(_norm(inp_ext), w1_ref[...]) + b1          # (N, 2C) f32

        # Halo rows outside the image must contribute zeros to conv2 (its zero
        # padding applies to conv1's *output*, not the raw input).
        top_valid = (t > 0).astype(F32)
        bot_valid = (t < nt - 1).astype(F32)
        row = jax.lax.broadcasted_iota(jnp.int32, (N, 1), 0)
        halo_scale = (jnp.where(row < W, top_valid, 1.0) *
                      jnp.where(row >= NI + W, bot_valid, 1.0))
        x_ext = x_ext * halo_scale

        # ---- conv2: 3x3 depthwise, padding=1 --------------------------------
        # Column offsets (dx = +-1) come from two +-1 flattened-row rolls; row
        # offsets (dy) are free static slices of the halo-extended buffers.
        # Circular wraps only land on rows whose output column is masked: this
        # requires W >= 2 and the 3x3 / pad=1 pattern (asserted in the wrapper).
        x_l = pltpu.roll(x_ext, 1, 0)        # x_l[i] = x_ext[i-1]  (dx = -1)
        x_r = pltpu.roll(x_ext, N - 1, 0)    # x_r[i] = x_ext[i+1]  (dx = +1)
        xc = x_ext.astype(ew)
        xl = x_l.astype(ew)
        xr = x_r.astype(ew)
        w2 = w2_ref[...]                     # (9, 2C), already in ew dtype

        def tap(src, ky, kx):                # static row slice * tap weight
            k = ky * 3 + kx
            return src[ky * W:ky * W + NI, :] * w2[k:k + 1, :]

        acc_c = tap(xc, 0, 1) + tap(xc, 1, 1) + tap(xc, 2, 1)
        acc_l = tap(xl, 0, 0) + tap(xl, 1, 0) + tap(xl, 2, 0)
        acc_r = tap(xr, 0, 2) + tap(xr, 1, 2) + tap(xr, 2, 2)

        # Hoisted column-boundary masks: one multiply per kx group.
        col = jax.lax.broadcasted_iota(jnp.int32, (NI, 1), 0) % W
        not_left = (col != 0).astype(ew)
        not_right = (col != W - 1).astype(ew)
        x = (acc_c + acc_l * not_left + acc_r * not_right).astype(F32) + b2

        # ---- SimpleGate ------------------------------------------------------
        x1 = x[:, :C] * x[:, C:]                                 # (NI, C) f32
        x1_ref[...] = x1.reshape(TH, W, C).astype(x1_ref.dtype)  # store bf16

        # ---- SCA global average pool: cross-tile reduction into the resident
        # (1, C) output block.  Correct only while grid axis 1 is "arbitrary".
        @pl.when(t == 0)
        def _():
            sca_ref[...] = jnp.zeros_like(sca_ref)

        sca_ref[...] += jnp.sum(x1, axis=0, keepdims=True)

        @pl.when(t == nt - 1)
        def _():
            pooled = sca_ref[...] * inv_hw
            sca_ref[...] = _mm(pooled, scaw_ref[...]) + scab_ref[...]

    return kernel


# ---------------------------------------------------------------------------
# Pass 2: x1*sca -> conv3 -> residual -> norm2 -> conv4 -> gate -> conv5 ->
# residual.  Purely per-pixel; fully parallel over (batch, row tiles).
# ---------------------------------------------------------------------------
def _make_pass2_kernel(W, C, TH):
    Ch = C // 2
    NI = TH * W

    def kernel(inp_ref, x1_ref, sca_ref, rows_ref, w3_ref, w4_ref, w5_ref,
               out_ref):
        inp = inp_ref[...].reshape(NI, C)
        x1 = x1_ref[...].reshape(NI, C).astype(F32)        # stored as bf16
        sca = sca_ref[...]                                  # (1, C) f32

        b3 = rows_ref[0:1, :]
        b4 = rows_ref[1:2, :]        # LN2 affine folded: b4' = n2b @ W4 + b4
        b5 = rows_ref[2:3, :]
        beta = rows_ref[3:4, :]
        gamma = rows_ref[4:5, :]
        sgb = rows_ref[5:6, :]

        x = _mm(x1 * sca, w3_ref[...]) + b3                 # conv3 (1x1)
        # TODO(synk): dropout1/dropout2 are Identity (drop_out_rate=0.0), omitted.
        y = inp + x * beta
        x = _mm(_norm(y), w4_ref[...]) + b4                 # folded norm2 + conv4
        tt = x + x1 * sgb
        g = tt[:, :Ch] * tt[:, Ch:]                         # SimpleGate
        x = _mm(g, w5_ref[...]) + b5                        # conv5 (1x1)
        out_ref[...] = (inp + x * gamma).reshape(TH, W, C)

    return kernel


def _pick_tile_rows(H, W, C, ew_bytes, budget_bytes):
    """Largest divisor of H whose pass-1 working set fits `budget_bytes`.

    Per-row model (pass 1 dominates pass 2):
      double-buffered I/O: inp f32 in (2*4 B) + x1 bf16 out (2*2 B)  = 12*W*C
      in-kernel temporaries: ext input f32 (4) + conv1 output f32 (8)
        + 3 shifted copies in the elementwise dtype (6*ew)
        + ~2 live (., 2C) f32 accumulation/result arrays (16) + gate (8)
    """
    per_row = W * C * (12 + 36 + 6 * ew_bytes)
    best = 1
    for th in range(1, H + 1):
        if H % th == 0 and (th + 2) * per_row <= budget_bytes:
            best = th
    return best


def nafblock_pallas(inp, params, tile_rows=None):
    B, H, W, C = inp.shape
    assert C % 2 == 0
    assert W >= 2, "flattened-roll depthwise conv requires W >= 2"

    vmem_limit = _vmem_limit_bytes()
    ew = BF16 if _has_bf16_vpu() else F32       # depthwise/elementwise VPU dtype
    ew_bytes = jnp.dtype(ew).itemsize

    TH = tile_rows if tile_rows is not None else _pick_tile_rows(
        H, W, C, ew_bytes, budget_bytes=int(vmem_limit * 0.8))
    assert H % TH == 0, "tile_rows must divide H"
    NT = H // TH

    # ---- fold the LayerNorm affines into the following 1x1 convs ----------
    w1f = params['w1'] * params['n1w'].reshape(C, 1)
    b1f = params['n1b'] @ params['w1'] + params['b1']
    w4f = params['w4'] * params['n2w'].reshape(C, 1)
    b4f = params['n2b'] @ params['w4'] + params['b4']

    # ---- pack the small per-channel row parameters ------------------------
    rows_2c1 = jnp.concatenate([b1f, params['b2']], axis=0)            # (2, 2C)
    rows_2 = jnp.concatenate(
        [params['b3'], b4f, params['b5'], params['beta'], params['gamma'],
         params['sgb']], axis=0)                                       # (6, C)
    w1 = w1f.astype(BF16)
    w2 = params['w2'].astype(ew)           # depthwise taps ride the VPU
    scaw = params['scaw'].astype(BF16)
    scab = params['scab']
    w3 = params['w3'].astype(BF16)
    w4 = w4f.astype(BF16)
    w5 = params['w5'].astype(BF16)

    def fullspec(a):
        return pl.BlockSpec(a.shape, lambda b, t, _nd=a.ndim: (0,) * _nd)

    tile_spec = pl.BlockSpec((pl.Squeezed(), TH, W, C),
                             lambda b, t: (b, t, 0, 0))
    # 1-row halos for the 3x3 depthwise conv (clamped at the image edges; the
    # kernel zeroes their contribution there).
    top_spec = pl.BlockSpec((pl.Squeezed(), pl.Squeezed(), W, C),
                            lambda b, t: (b, jnp.maximum(t * TH - 1, 0), 0, 0))
    bot_spec = pl.BlockSpec((pl.Squeezed(), pl.Squeezed(), W, C),
                            lambda b, t: (b, jnp.minimum((t + 1) * TH, H - 1),
                                          0, 0))
    sca_spec = pl.BlockSpec((pl.Squeezed(), 1, C), lambda b, t: (b, 0, 0))

    # ---- pass 1 ----
    x1_full, sca = pl.pallas_call(
        _make_pass1_kernel(H, W, C, TH, ew),
        out_shape=(jax.ShapeDtypeStruct((B, H, W, C), BF16),   # x1 stored bf16
                   jax.ShapeDtypeStruct((B, 1, C), F32)),
        grid_spec=pltpu.PrefetchScalarGridSpec(
            num_scalar_prefetch=0,
            grid=(B, NT),
            in_specs=[tile_spec, top_spec, bot_spec,
                      fullspec(rows_2c1), fullspec(scab),
                      fullspec(w1), fullspec(w2), fullspec(scaw)],
            out_specs=(tile_spec, sca_spec),
        ),
        compiler_params=pltpu.CompilerParams(
            # Axis 1 carries the SCA pool reduction -> must stay "arbitrary".
            dimension_semantics=("parallel", "arbitrary"),
            vmem_limit_bytes=vmem_limit),
    )(inp, inp, inp, rows_2c1, scab, w1, w2, scaw)

    # ---- pass 2 ----
    out = pl.pallas_call(
        _make_pass2_kernel(W, C, TH),
        out_shape=jax.ShapeDtypeStruct((B, H, W, C), F32),
        grid_spec=pltpu.PrefetchScalarGridSpec(
            num_scalar_prefetch=0,
            grid=(B, NT),
            in_specs=[tile_spec, tile_spec, sca_spec,
                      fullspec(rows_2), fullspec(w3), fullspec(w4),
                      fullspec(w5)],
            out_specs=tile_spec,
        ),
        compiler_params=pltpu.CompilerParams(
            dimension_semantics=("parallel", "parallel"),
            vmem_limit_bytes=vmem_limit),
    )(inp, x1_full, sca, rows_2, w3, w4, w5)

    return out


def init_params(key, c):
    dw = 2 * c          # DW_Expand = 2
    ffn = 2 * c         # FFN_Expand = 2
    ks = jax.random.split(key, 19)

    def nrm(k, shape, scale=0.1):
        return (scale * jax.random.normal(k, shape)).astype(jnp.float32)

    # Note: torch inits the norm weights/biases to ones/zeros and beta/gamma/
    # sg_b to zeros; nontrivial values are used here so the folded-affine path
    # and the full datapath are actually exercised (deterministic from the key).
    return dict(
        n1w=1.0 + nrm(ks[0], (1, c)),
        n1b=nrm(ks[1], (1, c)),
        w1=nrm(ks[2], (c, dw)),            # conv1 1x1: (in, out)
        b1=nrm(ks[3], (1, dw)),
        w2=nrm(ks[4], (9, dw)),            # conv2 depthwise 3x3: row = ky*3+kx
        b2=nrm(ks[5], (1, dw)),
        w3=nrm(ks[6], (dw // 2, c)),       # conv3 1x1
        b3=nrm(ks[7], (1, c)),
        scaw=nrm(ks[8], (dw // 2, dw // 2)),   # sca Linear (in, out)
        scab=nrm(ks[9], (1, dw // 2)),
        w4=nrm(ks[10], (c, ffn // 2)),     # conv4 1x1
        b4=nrm(ks[11], (1, ffn // 2)),
        w5=nrm(ks[12], (ffn // 4, c)),     # conv5 1x1
        b5=nrm(ks[13], (1, c)),
        n2w=1.0 + nrm(ks[14], (1, c)),
        n2b=nrm(ks[15], (1, c)),
        beta=nrm(ks[16], (1, c)),
        gamma=nrm(ks[17], (1, c)),
        sgb=nrm(ks[18], (1, ffn // 2)),
    )


def nafblock_ref(inp, p):
    """Pure-JAX f32 reference (NHWC), mirrors the PyTorch forward semantics."""
    B, H, W, C = inp.shape

    def ln(x, w, b):
        mu = jnp.mean(x, axis=-1, keepdims=True)
        var = jnp.mean((x - mu) ** 2, axis=-1, keepdims=True)
        return (x - mu) / jnp.sqrt(var + EPS) * w + b

    x = ln(inp, p['n1w'][0], p['n1b'][0])
    x = jnp.einsum('bhwc,cd->bhwd', x, p['w1'], precision=HIGHEST) + p['b1'][0]
    w2 = p['w2'].reshape(3, 3, 2 * C)
    xp = jnp.pad(x, ((0, 0), (1, 1), (1, 1), (0, 0)))
    acc = jnp.zeros_like(x)
    for ky in range(3):
        for kx in range(3):
            acc = acc + xp[:, ky:ky + H, kx:kx + W, :] * w2[ky, kx]
    x = acc + p['b2'][0]
    x1 = x[..., :C] * x[..., C:]
    pooled = jnp.mean(x1, axis=(1, 2), keepdims=True)
    sca = jnp.einsum('bhwc,cd->bhwd', pooled, p['scaw'],
                     precision=HIGHEST) + p['scab'][0]
    x = x1 * sca
    x = jnp.einsum('bhwc,cd->bhwd', x, p['w3'], precision=HIGHEST) + p['b3'][0]
    y = inp + x * p['beta'][0]
    x = ln(y, p['n2w'][0], p['n2b'][0])
    x = jnp.einsum('bhwc,cd->bhwd', x, p['w4'], precision=HIGHEST) + p['b4'][0]
    t = x + x1 * p['sgb'][0]
    x = t[..., :C // 2] * t[..., C // 2:]
    x = jnp.einsum('bhwc,cd->bhwd', x, p['w5'], precision=HIGHEST) + p['b5'][0]
    return inp + x * p['gamma'][0]


if __name__ == "__main__":
    B, C, H, W = 2, 8, 16, 16
    key = jax.random.PRNGKey(0)
    kx, kp = jax.random.split(key)
    inp = (0.5 * jax.random.normal(kx, (B, H, W, C))).astype(jnp.float32)
    params = init_params(kp, C)

    # tile_rows=4 forces 4 row tiles per image so the halo handling and the
    # cross-tile SCA pool reduction are exercised even at this toy size.
    out = nafblock_pallas(inp, params, tile_rows=4)
    out = jax.block_until_ready(out)

    ref = nafblock_ref(inp, params)
    assert out.shape == (B, H, W, C)
    err = float(jnp.max(jnp.abs(out - ref)))
    # bf16 MXU matmuls / bf16 x1 storage / (on v6e+) bf16 depthwise taps vs.
    # the f32 HIGHEST reference => loose tolerance.
    if not jnp.allclose(out, ref, atol=3e-2, rtol=3e-2):
        raise AssertionError(f"mismatch vs reference, max abs err {err}")
    print("KERNEL_OK")
</pallas_src>

<mosaic_0001>
module attributes {stable_mosaic.version = 11 : i64} {
  func.func @kernel(%arg0: i32, %arg1: i32, %arg2: memref<1x4x16x8xf32, #tpu.memory_space<vmem>>, %arg3: memref<1x1x16x8xf32, #tpu.memory_space<vmem>>, %arg4: memref<1x1x16x8xf32, #tpu.memory_space<vmem>>, %arg5: memref<2x16xf32, #tpu.memory_space<vmem>>, %arg6: memref<1x8xf32, #tpu.memory_space<vmem>>, %arg7: memref<8x16xbf16, #tpu.memory_space<vmem>>, %arg8: memref<9x16xbf16, #tpu.memory_space<vmem>>, %arg9: memref<8x8xbf16, #tpu.memory_space<vmem>>, %arg10: memref<1x4x16x8xbf16, #tpu.memory_space<vmem>>, %arg11: memref<1x1x8xf32, #tpu.memory_space<vmem>>) attributes {dimension_semantics = [#tpu.dimension_semantics<parallel>, #tpu.dimension_semantics<arbitrary>], iteration_bounds = array<i64: 2, 4>, scalar_prefetch = 0 : i64, scratch_operands = 0 : i64, tpu.core_type = #tpu.core_type<tc>, window_params = [{transform_indices = @transform_0, window_bounds = array<i64: 1, 4, 16, 8>}, {transform_indices = @transform_1, window_bounds = array<i64: 1, 1, 16, 8>}, {transform_indices = @transform_2, window_bounds = array<i64: 1, 1, 16, 8>}, {pipeline_mode = #tpu.pipeline_mode<synchronous>, transform_indices = @transform_3, window_bounds = array<i64: 2, 16>}, {pipeline_mode = #tpu.pipeline_mode<synchronous>, transform_indices = @transform_4, window_bounds = array<i64: 1, 8>}, {pipeline_mode = #tpu.pipeline_mode<synchronous>, transform_indices = @transform_5, window_bounds = array<i64: 8, 16>}, {pipeline_mode = #tpu.pipeline_mode<synchronous>, transform_indices = @transform_6, window_bounds = array<i64: 9, 16>}, {pipeline_mode = #tpu.pipeline_mode<synchronous>, transform_indices = @transform_7, window_bounds = array<i64: 8, 8>}, {transform_indices = @transform_8, window_bounds = array<i64: 1, 4, 16, 8>}, {transform_indices = @transform_9, window_bounds = array<i64: 1, 1, 8>}]} {
    %c0 = arith.constant 0 : index
    %c0_0 = arith.constant 0 : index
    %0 = vector.load %arg5[%c0, %c0_0] : memref<2x16xf32, #tpu.memory_space<vmem>>, vector<1x16xf32>
    %c1 = arith.constant 1 : index
    %c0_1 = arith.constant 0 : index
    %1 = vector.load %arg5[%c1, %c0_1] : memref<2x16xf32, #tpu.memory_space<vmem>>, vector<1x16xf32>
    %c0_2 = arith.constant 0 : index
    %c0_3 = arith.constant 0 : index
    %c0_4 = arith.constant 0 : index
    %c0_5 = arith.constant 0 : index
    %2 = vector.load %arg3[%c0_2, %c0_3, %c0_4, %c0_5] : memref<1x1x16x8xf32, #tpu.memory_space<vmem>>, vector<1x1x16x8xf32>
    %3 = vector.shape_cast %2 : vector<1x1x16x8xf32> to vector<16x8xf32>
    %c0_6 = arith.constant 0 : index
    %c0_7 = arith.constant 0 : index
    %c0_8 = arith.constant 0 : index
    %c0_9 = arith.constant 0 : index
    %4 = vector.load %arg2[%c0_6, %c0_7, %c0_8, %c0_9] : memref<1x4x16x8xf32, #tpu.memory_space<vmem>>, vector<1x4x16x8xf32>
    %5 = vector.shape_cast %4 : vector<1x4x16x8xf32> to vector<4x16x8xf32>
    %6 = vector.shape_cast %5 : vector<4x16x8xf32> to vector<64x8xf32>
    %c0_10 = arith.constant 0 : index
    %c0_11 = arith.constant 0 : index
    %c0_12 = arith.constant 0 : index
    %c0_13 = arith.constant 0 : index
    %7 = vector.load %arg4[%c0_10, %c0_11, %c0_12, %c0_13] : memref<1x1x16x8xf32, #tpu.memory_space<vmem>>, vector<1x1x16x8xf32>
    %8 = vector.shape_cast %7 : vector<1x1x16x8xf32> to vector<16x8xf32>
    %9 = tpu.concatenate %3, %6, %8 in 0 : vector<16x8xf32>, vector<64x8xf32>, vector<16x8xf32> -> vector<96x8xf32>
    %cst = arith.constant dense<0.000000e+00> : vector<96xf32>
    %10 = vector.multi_reduction <add>, %9, %cst [1] : vector<96x8xf32> to vector<96xf32>
    %11 = vector.shape_cast %10 : vector<96xf32> to vector<96x1xf32>
    %cst_14 = arith.constant 8.000000e+00 : f32
    %12 = vector.broadcast %cst_14 : f32 to vector<96x1xf32>
    %13 = arith.divf %11, %12 : vector<96x1xf32>
    %14 = vector.broadcast %13 : vector<96x1xf32> to vector<96x8xf32>
    %15 = arith.subf %9, %14 : vector<96x8xf32>
    %16 = arith.mulf %15, %15 : vector<96x8xf32>
    %cst_15 = arith.constant dense<0.000000e+00> : vector<96xf32>
    %17 = vector.multi_reduction <add>, %16, %cst_15 [1] : vector<96x8xf32> to vector<96xf32>
    %18 = vector.shape_cast %17 : vector<96xf32> to vector<96x1xf32>
    %cst_16 = arith.constant 8.000000e+00 : f32
    %19 = vector.broadcast %cst_16 : f32 to vector<96x1xf32>
    %20 = arith.divf %18, %19 : vector<96x1xf32>
    %21 = vector.broadcast %13 : vector<96x1xf32> to vector<96x8xf32>
    %22 = arith.subf %9, %21 : vector<96x8xf32>
    %cst_17 = arith.constant 9.99999997E-7 : f32
    %23 = vector.broadcast %cst_17 : f32 to vector<96x1xf32>
    %24 = arith.addf %20, %23 : vector<96x1xf32>
    %25 = math.rsqrt %24 : vector<96x1xf32>
    %26 = vector.broadcast %25 : vector<96x1xf32> to vector<96x8xf32>
    %27 = arith.mulf %22, %26 : vector<96x8xf32>
    %c0_18 = arith.constant 0 : index
    %c0_19 = arith.constant 0 : index
    %28 = vector.load %arg7[%c0_18, %c0_19] : memref<8x16xbf16, #tpu.memory_space<vmem>>, vector<8x16xbf16>
    %29 = arith.truncf %27 : vector<96x8xf32> to vector<96x8xbf16>
    %cst_20 = arith.constant dense<0.000000e+00> : vector<96x16xf32>
    %30 = tpu.matmul %29, %28, %cst_20 {dimension_numbers = #tpu.dot_dimension_numbers<[1], [0], [0], [1], [0, 0, 1, 1], [], []>} : vector<96x8xbf16>, vector<8x16xbf16>, vector<96x16xf32> -> vector<96x16xf32>
    %31 = vector.broadcast %0 : vector<1x16xf32> to vector<96x16xf32>
    %32 = arith.addf %30, %31 : vector<96x16xf32>
    %c0_i32 = arith.constant 0 : i32
    %33 = arith.cmpi sgt, %arg1, %c0_i32 : i32
    %34 = arith.extui %33 : i1 to i32
    %35 = arith.sitofp %34 : i32 to f32
    %c3_i32 = arith.constant 3 : i32
    %36 = arith.cmpi slt, %arg1, %c3_i32 : i32
    %37 = arith.extui %36 : i1 to i32
    %38 = arith.sitofp %37 : i32 to f32
    %39 = tpu.iota {dimensions = array<i32: 0>} : vector<96x1xi32>
    %c16_i32 = arith.constant 16 : i32
    %40 = vector.broadcast %c16_i32 : i32 to vector<96x1xi32>
    %41 = arith.cmpi slt, %39, %40 : vector<96x1xi32>
    %cst_21 = arith.constant 1.000000e+00 : f32
    %42 = vector.broadcast %35 : f32 to vector<96x1xf32>
    %43 = vector.broadcast %cst_21 : f32 to vector<96x1xf32>
    %44 = arith.select %41, %42, %43 : vector<96x1xi1>, vector<96x1xf32>
    %c80_i32 = arith.constant 80 : i32
    %45 = vector.broadcast %c80_i32 : i32 to vector<96x1xi32>
    %46 = arith.cmpi sge, %39, %45 : vector<96x1xi32>
    %cst_22 = arith.constant 1.000000e+00 : f32
    %47 = vector.broadcast %38 : f32 to vector<96x1xf32>
    %48 = vector.broadcast %cst_22 : f32 to vector<96x1xf32>
    %49 = arith.select %46, %47, %48 : vector<96x1xi1>, vector<96x1xf32>
    %50 = arith.mulf %44, %49 : vector<96x1xf32>
    %51 = vector.broadcast %50 : vector<96x1xf32> to vector<96x16xf32>
    %52 = arith.mulf %32, %51 : vector<96x16xf32>
    %c1_i32 = arith.constant 1 : i32
    %53 = tpu.dynamic_rotate %52 by %c1_i32 dim 0 : vector<96x16xf32>, i32 -> vector<96x16xf32>
    %c95_i32 = arith.constant 95 : i32
    %54 = tpu.dynamic_rotate %52 by %c95_i32 dim 0 : vector<96x16xf32>, i32 -> vector<96x16xf32>
    %55 = arith.truncf %52 : vector<96x16xf32> to vector<96x16xbf16>
    %56 = arith.truncf %53 : vector<96x16xf32> to vector<96x16xbf16>
    %57 = arith.truncf %54 : vector<96x16xf32> to vector<96x16xbf16>
    %c0_23 = arith.constant 0 : index
    %c0_24 = arith.constant 0 : index
    %58 = vector.load %arg8[%c0_23, %c0_24] : memref<9x16xbf16, #tpu.memory_space<vmem>>, vector<9x16xbf16>
    %59 = vector.extract_strided_slice %55 {offsets = [0, 0], sizes = [64, 16], strides = [1, 1]} : vector<96x16xbf16> to vector<64x16xbf16>
    %60 = vector.extract_strided_slice %58 {offsets = [1, 0], sizes = [1, 16], strides = [1, 1]} : vector<9x16xbf16> to vector<1x16xbf16>
    %61 = vector.broadcast %60 : vector<1x16xbf16> to vector<64x16xbf16>
    %62 = arith.mulf %59, %61 : vector<64x16xbf16>
    %63 = vector.extract_strided_slice %55 {offsets = [16, 0], sizes = [64, 16], strides = [1, 1]} : vector<96x16xbf16> to vector<64x16xbf16>
    %64 = vector.extract_strided_slice %58 {offsets = [4, 0], sizes = [1, 16], strides = [1, 1]} : vector<9x16xbf16> to vector<1x16xbf16>
    %65 = vector.broadcast %64 : vector<1x16xbf16> to vector<64x16xbf16>
    %66 = arith.mulf %63, %65 : vector<64x16xbf16>
    %67 = arith.addf %62, %66 : vector<64x16xbf16>
    %68 = vector.extract_strided_slice %55 {offsets = [32, 0], sizes = [64, 16], strides = [1, 1]} : vector<96x16xbf16> to vector<64x16xbf16>
    %69 = vector.extract_strided_slice %58 {offsets = [7, 0], sizes = [1, 16], strides = [1, 1]} : vector<9x16xbf16> to vector<1x16xbf16>
    %70 = vector.broadcast %69 : vector<1x16xbf16> to vector<64x16xbf16>
    %71 = arith.mulf %68, %70 : vector<64x16xbf16>
    %72 = arith.addf %67, %71 : vector<64x16xbf16>
    %73 = vector.extract_strided_slice %56 {offsets = [0, 0], sizes = [64, 16], strides = [1, 1]} : vector<96x16xbf16> to vector<64x16xbf16>
    %74 = vector.extract_strided_slice %58 {offsets = [0, 0], sizes = [1, 16], strides = [1, 1]} : vector<9x16xbf16> to vector<1x16xbf16>
    %75 = vector.broadcast %74 : vector<1x16xbf16> to vector<64x16xbf16>
    %76 = arith.mulf %73, %75 : vector<64x16xbf16>
    %77 = vector.extract_strided_slice %56 {offsets = [16, 0], sizes = [64, 16], strides = [1, 1]} : vector<96x16xbf16> to vector<64x16xbf16>
    %78 = vector.extract_strided_slice %58 {offsets = [3, 0], sizes = [1, 16], strides = [1, 1]} : vector<9x16xbf16> to vector<1x16xbf16>
    %79 = vector.broadcast %78 : vector<1x16xbf16> to vector<64x16xbf16>
    %80 = arith.mulf %77, %79 : vector<64x16xbf16>
    %81 = arith.addf %76, %80 : vector<64x16xbf16>
    %82 = vector.extract_strided_slice %56 {offsets = [32, 0], sizes = [64, 16], strides = [1, 1]} : vector<96x16xbf16> to vector<64x16xbf16>
    %83 = vector.extract_strided_slice %58 {offsets = [6, 0], sizes = [1, 16], strides = [1, 1]} : vector<9x16xbf16> to vector<1x16xbf16>
    %84 = vector.broadcast %83 : vector<1x16xbf16> to vector<64x16xbf16>
    %85 = arith.mulf %82, %84 : vector<64x16xbf16>
    %86 = arith.addf %81, %85 : vector<64x16xbf16>
    %87 = vector.extract_strided_slice %57 {offsets = [0, 0], sizes = [64, 16], strides = [1, 1]} : vector<96x16xbf16> to vector<64x16xbf16>
    %88 = vector.extract_strided_slice %58 {offsets = [2, 0], sizes = [1, 16], strides = [1, 1]} : vector<9x16xbf16> to vector<1x16xbf16>
    %89 = vector.broadcast %88 : vector<1x16xbf16> to vector<64x16xbf16>
    %90 = arith.mulf %87, %89 : vector<64x16xbf16>
    %91 = vector.extract_strided_slice %57 {offsets = [16, 0], sizes = [64, 16], strides = [1, 1]} : vector<96x16xbf16> to vector<64x16xbf16>
    %92 = vector.extract_strided_slice %58 {offsets = [5, 0], sizes = [1, 16], strides = [1, 1]} : vector<9x16xbf16> to vector<1x16xbf16>
    %93 = vector.broadcast %92 : vector<1x16xbf16> to vector<64x16xbf16>
    %94 = arith.mulf %91, %93 : vector<64x16xbf16>
    %95 = arith.addf %90, %94 : vector<64x16xbf16>
    %96 = vector.extract_strided_slice %57 {offsets = [32, 0], sizes = [64, 16], strides = [1, 1]} : vector<96x16xbf16> to vector<64x16xbf16>
    %97 = vector.extract_strided_slice %58 {offsets = [8, 0], sizes = [1, 16], strides = [1, 1]} : vector<9x16xbf16> to vector<1x16xbf16>
    %98 = vector.broadcast %97 : vector<1x16xbf16> to vector<64x16xbf16>
    %99 = arith.mulf %96, %98 : vector<64x16xbf16>
    %100 = arith.addf %95, %99 : vector<64x16xbf16>
    %101 = tpu.iota {dimensions = array<i32: 0>} : vector<64x1xi32>
    %c16_i32_25 = arith.constant 16 : i32
    %c0_i32_26 = arith.constant 0 : i32
    %102 = arith.cmpi eq, %c16_i32_25, %c0_i32_26 : i32
    %c1_i32_27 = arith.constant 1 : i32
    %103 = arith.select %102, %c1_i32_27, %c16_i32_25 : i32
    %104 = vector.broadcast %103 : i32 to vector<64x1xi32>
    %105 = arith.remsi %101, %104 : vector<64x1xi32>
    %c0_i32_28 = arith.constant 0 : i32
    %106 = vector.broadcast %c0_i32_28 : i32 to vector<64x1xi32>
    %107 = arith.cmpi ne, %105, %106 : vector<64x1xi32>
    %c0_i32_29 = arith.constant 0 : i32
    %108 = vector.broadcast %c0_i32_29 : i32 to vector<64x1xi32>
    %109 = arith.cmpi slt, %105, %108 : vector<64x1xi32>
    %c0_i32_30 = arith.constant 0 : i32
    %110 = arith.cmpi slt, %103, %c0_i32_30 : i32
    %111 = vector.broadcast %110 : i1 to vector<64x1xi1>
    %112 = vector.broadcast %111 : vector<64x1xi1> to vector<64x1xi1>
    %113 = arith.xori %109, %112 : vector<64x1xi1>
    %114 = arith.andi %113, %107 : vector<64x1xi1>
    %115 = vector.broadcast %103 : i32 to vector<64x1xi32>
    %116 = arith.addi %105, %115 : vector<64x1xi32>
    %117 = arith.select %114, %116, %105 : vector<64x1xi1>, vector<64x1xi32>
    %c0_i32_31 = arith.constant 0 : i32
    %118 = vector.broadcast %c0_i32_31 : i32 to vector<64x1xi32>
    %119 = arith.cmpi ne, %117, %118 : vector<64x1xi32>
    %120 = arith.extui %119 : vector<64x1xi1> to vector<64x1xi32>
    %121 = arith.sitofp %120 : vector<64x1xi32> to vector<64x1xf32>
    %122 = arith.truncf %121 : vector<64x1xf32> to vector<64x1xbf16>
    %c15_i32 = arith.constant 15 : i32
    %123 = vector.broadcast %c15_i32 : i32 to vector<64x1xi32>
    %124 = arith.cmpi ne, %117, %123 : vector<64x1xi32>
    %125 = arith.extui %124 : vector<64x1xi1> to vector<64x1xi32>
    %126 = arith.sitofp %125 : vector<64x1xi32> to vector<64x1xf32>
    %127 = arith.truncf %126 : vector<64x1xf32> to vector<64x1xbf16>
    %128 = vector.broadcast %122 : vector<64x1xbf16> to vector<64x16xbf16>
    %129 = arith.mulf %86, %128 : vector<64x16xbf16>
    %130 = arith.addf %72, %129 : vector<64x16xbf16>
    %131 = vector.broadcast %127 : vector<64x1xbf16> to vector<64x16xbf16>
    %132 = arith.mulf %100, %131 : vector<64x16xbf16>
    %133 = arith.addf %130, %132 : vector<64x16xbf16>
    %134 = arith.extf %133 : vector<64x16xbf16> to vector<64x16xf32>
    %135 = vector.broadcast %1 : vector<1x16xf32> to vector<64x16xf32>
    %136 = arith.addf %134, %135 : vector<64x16xf32>
    %137 = vector.extract_strided_slice %136 {offsets = [0, 0], sizes = [64, 8], strides = [1, 1]} : vector<64x16xf32> to vector<64x8xf32>
    %138 = vector.extract_strided_slice %136 {offsets = [0, 8], sizes = [64, 8], strides = [1, 1]} : vector<64x16xf32> to vector<64x8xf32>
    %139 = arith.mulf %137, %138 : vector<64x8xf32>
    %140 = vector.shape_cast %139 : vector<64x8xf32> to vector<4x16x8xf32>
    %141 = arith.truncf %140 : vector<4x16x8xf32> to vector<4x16x8xbf16>
    %c0_32 = arith.constant 0 : index
    %c0_33 = arith.constant 0 : index
    %c0_34 = arith.constant 0 : index
    %c0_35 = arith.constant 0 : index
    %142 = vector.load %arg10[%c0_32, %c0_33, %c0_34, %c0_35] : memref<1x4x16x8xbf16, #tpu.memory_space<vmem>>, vector<1x4x16x8xbf16>
    %143 = vector.shape_cast %142 : vector<1x4x16x8xbf16> to vector<4x16x8xbf16>
    %144 = vector.shape_cast %141 : vector<4x16x8xbf16> to vector<1x4x16x8xbf16>
    tpu.vector_store %arg10[%c0_32, %c0_33, %c0_34, %c0_35], %144 {strides = array<i32>} : memref<1x4x16x8xbf16, #tpu.memory_space<vmem>>, vector<1x4x16x8xbf16>,
    %c0_i32_36 = arith.constant 0 : i32
    %145 = arith.cmpi eq, %arg1, %c0_i32_36 : i32
    %146 = arith.extui %145 : i1 to i32
    %c0_i32_37 = arith.constant 0 : i32
    %147 = arith.cmpi ne, %146, %c0_i32_37 : i32
    scf.if %147 {
      %cst_47 = arith.constant 0.000000e+00 : f32
      %159 = vector.broadcast %cst_47 : f32 to vector<1x8xf32>
      %c0_48 = arith.constant 0 : index
      %c0_49 = arith.constant 0 : index
      %c0_50 = arith.constant 0 : index
      %160 = vector.load %arg11[%c0_48, %c0_49, %c0_50] : memref<1x1x8xf32, #tpu.memory_space<vmem>>, vector<1x1x8xf32>
      %161 = vector.shape_cast %160 : vector<1x1x8xf32> to vector<1x8xf32>
      %162 = vector.shape_cast %159 : vector<1x8xf32> to vector<1x1x8xf32>
      tpu.vector_store %arg11[%c0_48, %c0_49, %c0_50], %162 {strides = array<i32>} : memref<1x1x8xf32, #tpu.memory_space<vmem>>, vector<1x1x8xf32>,
    } else {
    }
    %c0_38 = arith.constant 0 : index
    %c0_39 = arith.constant 0 : index
    %c0_40 = arith.constant 0 : index
    %148 = vector.load %arg11[%c0_38, %c0_39, %c0_40] : memref<1x1x8xf32, #tpu.memory_space<vmem>>, vector<1x1x8xf32>
    %149 = vector.shape_cast %148 : vector<1x1x8xf32> to vector<1x8xf32>
    %cst_41 = arith.constant dense<0.000000e+00> : vector<8xf32>
    %150 = vector.multi_reduction <add>, %139, %cst_41 [0] : vector<64x8xf32> to vector<8xf32>
    %151 = vector.shape_cast %150 : vector<8xf32> to vector<1x8xf32>
    %152 = arith.addf %149, %151 : vector<1x8xf32>
    %c0_42 = arith.constant 0 : index
    %c0_43 = arith.constant 0 : index
    %c0_44 = arith.constant 0 : index
    %153 = vector.load %arg11[%c0_42, %c0_43, %c0_44] : memref<1x1x8xf32, #tpu.memory_space<vmem>>, vector<1x1x8xf32>
    %154 = vector.shape_cast %153 : vector<1x1x8xf32> to vector<1x8xf32>
    %155 = vector.shape_cast %152 : vector<1x8xf32> to vector<1x1x8xf32>
    tpu.vector_store %arg11[%c0_42, %c0_43, %c0_44], %155 {strides = array<i32>} : memref<1x1x8xf32, #tpu.memory_space<vmem>>, vector<1x1x8xf32>,
    %c3_i32_45 = arith.constant 3 : i32
    %156 = arith.cmpi eq, %arg1, %c3_i32_45 : i32
    %157 = arith.extui %156 : i1 to i32
    %c0_i32_46 = arith.constant 0 : i32
    %158 = arith.cmpi ne, %157, %c0_i32_46 : i32
    scf.if %158 {
      %c0_47 = arith.constant 0 : index
      %c0_48 = arith.constant 0 : index
      %c0_49 = arith.constant 0 : index
      %159 = vector.load %arg11[%c0_47, %c0_48, %c0_49] : memref<1x1x8xf32, #tpu.memory_space<vmem>>, vector<1x1x8xf32>
      %160 = vector.shape_cast %159 : vector<1x1x8xf32> to vector<1x8xf32>
      %cst_50 = arith.constant 3.906250e-03 : f32
      %161 = vector.broadcast %cst_50 : f32 to vector<1x8xf32>
      %162 = arith.mulf %160, %161 : vector<1x8xf32>
      %c0_51 = arith.constant 0 : index
      %c0_52 = arith.constant 0 : index
      %163 = vector.load %arg9[%c0_51, %c0_52] : memref<8x8xbf16, #tpu.memory_space<vmem>>, vector<8x8xbf16>
      %164 = arith.truncf %162 : vector<1x8xf32> to vector<1x8xbf16>
      %cst_53 = arith.constant dense<0.000000e+00> : vector<1x8xf32>
      %165 = tpu.matmul %164, %163, %cst_53 {dimension_numbers = #tpu.dot_dimension_numbers<[1], [0], [0], [1], [0, 0, 1, 1], [], []>} : vector<1x8xbf16>, vector<8x8xbf16>, vector<1x8xf32> -> vector<1x8xf32>
      %c0_54 = arith.constant 0 : index
      %c0_55 = arith.constant 0 : index
      %166 = vector.load %arg6[%c0_54, %c0_55] : memref<1x8xf32, #tpu.memory_space<vmem>>, vector<1x8xf32>
      %167 = arith.addf %165, %166 : vector<1x8xf32>
      %c0_56 = arith.constant 0 : index
      %c0_57 = arith.constant 0 : index
      %c0_58 = arith.constant 0 : index
      %168 = vector.load %arg11[%c0_56, %c0_57, %c0_58] : memref<1x1x8xf32, #tpu.memory_space<vmem>>, vector<1x1x8xf32>
      %169 = vector.shape_cast %168 : vector<1x1x8xf32> to vector<1x8xf32>
      %170 = vector.shape_cast %167 : vector<1x8xf32> to vector<1x1x8xf32>
      tpu.vector_store %arg11[%c0_56, %c0_57, %c0_58], %170 {strides = array<i32>} : memref<1x1x8xf32, #tpu.memory_space<vmem>>, vector<1x1x8xf32>,
    } else {
    }
    return
  }
  func.func @transform_0(%arg0: i32, %arg1: i32) -> (i32, i32, i32, i32) {
    %c0_i32 = arith.constant 0 : i32
    %c0_i32_0 = arith.constant 0 : i32
    %c0_i32_1 = arith.constant 0 : i32
    return %arg0, %arg1, %c0_i32, %c0_i32_0 : i32, i32, i32, i32
  }
  func.func @transform_1(%arg0: i32, %arg1: i32) -> (i32, i32, i32, i32) {
    %c4_i32 = arith.constant 4 : i32
    %0 = arith.muli %arg1, %c4_i32 : i32
    %c1_i32 = arith.constant 1 : i32
    %1 = arith.subi %0, %c1_i32 : i32
    %c0_i32 = arith.constant 0 : i32
    %2 = arith.maxsi %1, %c0_i32 : i32
    %c0_i32_0 = arith.constant 0 : i32
    %c0_i32_1 = arith.constant 0 : i32
    %c0_i32_2 = arith.constant 0 : i32
    return %arg0, %2, %c0_i32_0, %c0_i32_1 : i32, i32, i32, i32
  }
  func.func @transform_2(%arg0: i32, %arg1: i32) -> (i32, i32, i32, i32) {
    %c1_i32 = arith.constant 1 : i32
    %0 = arith.addi %arg1, %c1_i32 : i32
    %c4_i32 = arith.constant 4 : i32
    %1 = arith.muli %0, %c4_i32 : i32
    %c15_i32 = arith.constant 15 : i32
    %2 = arith.minsi %1, %c15_i32 : i32
    %c0_i32 = arith.constant 0 : i32
    %c0_i32_0 = arith.constant 0 : i32
    %c0_i32_1 = arith.constant 0 : i32
    return %arg0, %2, %c0_i32, %c0_i32_0 : i32, i32, i32, i32
  }
  func.func @transform_3(%arg0: i32, %arg1: i32) -> (i32, i32) {
    %c0_i32 = arith.constant 0 : i32
    %c0_i32_0 = arith.constant 0 : i32
    %c0_i32_1 = arith.constant 0 : i32
    return %c0_i32, %c0_i32_0 : i32, i32
  }
  func.func @transform_4(%arg0: i32, %arg1: i32) -> (i32, i32) {
    %c0_i32 = arith.constant 0 : i32
    %c0_i32_0 = arith.constant 0 : i32
    %c0_i32_1 = arith.constant 0 : i32
    return %c0_i32, %c0_i32_0 : i32, i32
  }
  func.func @transform_5(%arg0: i32, %arg1: i32) -> (i32, i32) {
    %c0_i32 = arith.constant 0 : i32
    %c0_i32_0 = arith.constant 0 : i32
    %c0_i32_1 = arith.constant 0 : i32
    return %c0_i32, %c0_i32_0 : i32, i32
  }
  func.func @transform_6(%arg0: i32, %arg1: i32) -> (i32, i32) {
    %c0_i32 = arith.constant 0 : i32
    %c0_i32_0 = arith.constant 0 : i32
    %c0_i32_1 = arith.constant 0 : i32
    return %c0_i32, %c0_i32_0 : i32, i32
  }
  func.func @transform_7(%arg0: i32, %arg1: i32) -> (i32, i32) {
    %c0_i32 = arith.constant 0 : i32
    %c0_i32_0 = arith.constant 0 : i32
    %c0_i32_1 = arith.constant 0 : i32
    return %c0_i32, %c0_i32_0 : i32, i32
  }
  func.func @transform_8(%arg0: i32, %arg1: i32) -> (i32, i32, i32, i32) {
    %c0_i32 = arith.constant 0 : i32
    %c0_i32_0 = arith.constant 0 : i32
    %c0_i32_1 = arith.constant 0 : i32
    return %arg0, %arg1, %c0_i32, %c0_i32_0 : i32, i32, i32, i32
  }
  func.func @transform_9(%arg0: i32, %arg1: i32) -> (i32, i32, i32) {
    %c0_i32 = arith.constant 0 : i32
    %c0_i32_0 = arith.constant 0 : i32
    %c0_i32_1 = arith.constant 0 : i32
    return %arg0, %c0_i32, %c0_i32_0 : i32, i32, i32
  }
}

</mosaic_0001>

<bundles_post_ra>
// kernel: tpu_custom_call.1
= control target key start
LH: loop header
LB: loop body
LE: loop exit
PB: predicated region body
PF: predicated region fallthrough
CT: control target
= control target key end

     0   :  { %s3527_s0 = inlined_call_operand.vmem [shape: f32[2,16,16,8], index: 0, kind: input, shape index: {}]   ;;  %s3528_s1 = inlined_call_operand.vmem [shape: f32[2,16,16,8], index: 1, kind: input, shape index: {}]   ;;  %s3529_s2 = inlined_call_operand.vmem [shape: f32[2,16,16,8], index: 2, kind: input, shape index: {}]   ;;  %s3530_s3 = inlined_call_operand.vmem [shape: f32[2,16], index: 3, kind: input, shape index: {}]   ;;  %s3531_s4 = inlined_call_operand.vmem [shape: f32[1,8], index: 4, kind: input, shape index: {}]   ;;  %s3532_s5 = inlined_call_operand.vmem [shape: bf16[8,16], index: 5, kind: input, shape index: {}]   ;;  %s3533_s6 = inlined_call_operand.vmem [shape: bf16[9,16], index: 6, kind: input, shape index: {}]   ;;  %s3534_s7 = inlined_call_operand.vmem [shape: bf16[8,8], index: 7, kind: input, shape index: {}]   ;;  %s3535_s8 = inlined_call_operand.vmem [shape: bf16[2,16,16,8], index: 8, kind: output, shape index: {0}]   ;;  %s3536_s9 = inlined_call_operand.hbm [shape: f32[2,1,8], index: 9, kind: output, shape index: {1}]  }
   0x1   :  { %3552 = sst [smem:[#allocation23_spill]] %s3527_s0 }
   0x2   :  { %15 = vsyncpa [#allocation3], 0 }
   0x3   :  { %17 = vsyncpa [#allocation3 + $0x1], 0  ;;  %s2376_s30 = smov 0   ;;  %s2378_s10 = smov 0  }
   0x4   :  { %s2380_s11 = smov 0   ;;  %s2382_s12 = smov 0  }
   0x5   :  { %s2384_s13 = smov 0   ;;  %s2386_s14 = smov 0  }
   0x6   :  { %s2388_s15 = smov 0   ;;  %s2390_s16 = smov 0  }
   0x7 LB: > { %3553 = sst [smem:[#allocation5_spill]] %s2311_s14  ;;  %s2055_s17 = sadd.s32 4294967295, %s2319_s16   ;;  %s2319_s16 = sphi %s2390_s16, %s23_s16   ;;  %s2315_s15 = sphi %s2388_s15, %s3628_s15   ;;  %s2311_s14 = sphi %s2386_s14, %s3627_s14   ;;  %s2307_s13 = sphi %s2384_s13, %s3626_s13   ;;  %s2303_s12 = sphi %s2382_s12, %s3625_s12   ;;  %s2299_s11 = sphi %s2380_s11, %s3631_s11   ;;  %s2295_s10 = sphi %s2378_s10, %s3630_s10   ;;  %s2291_s30 = sphi %s2376_s30, %s3629_s30  }
   0x8   : > { %3554 = sst [smem:[#allocation6_spill]] %s2315_s15  ;;  %s2056_s18 = sadd.s32 4294967294, %s2319_s16  }
   0x9   : > { %s32_s19 = sadd.s32 1, %s2311_s14  ;;  %s35_s20 = sadd.s32 1, %s2315_s15 }
   0xa   : > { %p33_p0 = scmp.ge.s32.totalorder %s32_s19, 4  ;;  %p285_p1 = scmp.ne.s32.totalorder %s2299_s11, %s2295_s10 }
   0xb   : > { %p286_p2 = scmp.eq.s32.totalorder %s2055_s17, 7  ;;  %p291_p4 = scmp.ne.s32.totalorder %s2295_s10, %s2291_s30 }
   0xc   : > { %s3633_s19 = smov (%p33_p0, %s32_s19), 0  ;;  %s3635_s20 = smov (!%p33_p0, %s35_s20), %s2315_s15 }
   0xd   : > { %3555 = sst [smem:[#allocation7_spill]] %s3633_s19  ;;  %p2425_p3 = por %p286_p2, %p285_p1 }
   0xe   : > { %p37_p5 = scmp.ge.s32.totalorder %s3635_s20, 2  ;;  %p292_p6 = scmp.eq.s32.totalorder %s2056_s18, 7 }
   0xf   : > { %p2065_p7 = scmp.ge.s32.totalorder %s2319_s16, 1  ;;  %p379_p8 = scmp.lt.s32.totalorder %s2319_s16, 9 }
  0x10   : > { %s3637_s20 = smov (%p37_p5, %s3635_s20), 0  ;;  %p2435_p9 = por %p292_p6, %p291_p4 }
  0x11   : > { %3557 = sst [smem:[#allocation8_spill]] %s3637_s20  ;;  %p380_p10 = pnand %p2065_p7, %p379_p8 }
  0x12   : > { %s272_s23 = ssub.s32 %s2315_s15, %s3637_s20  ;;  %s275_s24 = sadd.s32 1, %s2299_s11 }
  0x13   : > { %p273_p11 = scmp.eq.s32.totalorder %s272_s23, 0  ;;  %383 = sbr.rel (%p380_p10) target bundleno = 935 (0x3a7), region = 52 }
  0x15   : > { %s2443_s25 = scalar_select %p273_p11, %s2299_s11, %s275_s24  }
  0x18   : > { %s2066_s26 = sshll.u32 %s2303_s12, 2  ;;  %p456_p12 = scmp.lt.s32.totalorder %s2307_s13, 1  ;;  %vm526_vm0 = vcmask 64512   ;;  %v2321_v24 = vmov 8.0   ;;  %vm824_vm2 = vcmask 1043456  }
  0x19   : > { %p458_p13 = scmp.lt.s32.totalorder %s2066_s26, 15  ;;  %s2117_s27 = sadd.s32 4, %s2066_s26  ;;  %2199 = vrcp.f32 %v2321_v24 }
  0x1a   : > { %s457_s28 = scalar_select %p456_p12, %s2307_s13, 1 }
  0x1b   : > { %s459_s29 = scalar_select %p458_p13, %s2066_s26, 15 }
  0x1c   : > { %s2448_s17 = sshll.u32 %s457_s28, 5  ;;  %p2450_p0 = scmp.lt.s32.totalorder %s2117_s27, 15 }
  0x1d   : > { %s2067_s23 = sshll.u32 %s459_s29, 1  ;;  %s2071_s24 = sadd.s32 4294967295, %s2066_s26 }
  0x1e   : > { %s2455_s20 = sadd.s32 %s2448_s17, %s2067_s23  ;;  %s3560_s0 = sld [smem:[#allocation23_spill]] }
  0x1f   : > { %s2069_s19 = sshll.u32 %s2455_s20, 3  ;;  %p468_p1 = scmp.gt.s32.totalorder %s2071_s24, 0  ;;  %v2200_v25 = vpop.eup %2199 }
  0x20   : > { %s3639_s27 = smov (!%p2450_p0, %s2117_s27), 15  ;;  %p2072_p2 = scmp.lt.s32.totalorder %s2071_s24, 15  ;;  %v564_v26 = vmul.f32 8.0, %v2200_v25  ;;  %vm568_vm1 = vweird.f32 %v2200_v25 }
  0x21   : > { %s3641_s27 = smov (!%p2450_p0, %s3639_s27), 15  ;;  %p867_p4 = scmp.gt.s32.totalorder %s2303_s12, 0 }
  0x22   : > { %s469_s14 = scalar_select %p468_p1, %s2071_s24, 0  ;;  %v565_v27 = vsub.f32 1.0, %v564_v26 }
  0x23   : > { %s2084_s15 = sshll.u32 %s3641_s27, 1  ;;  %p870_p5 = scmp.lt.s32.totalorder %s2303_s12, 3 }
  0x24   : > { %s2461_s28 = scalar_lea.vmem %s3560_s0, %s2069_s19  ;;  %s493_s19 = sadd.s32 %s2084_s15, %s2448_s17  ;;  %v566_v28 = vmul.f32 %v2200_v25, %v565_v27 }
  0x25   : > { %v520_v0 = vld [vmem:[%s2461_s28 + $0x20] sm:$0xff]  ;;  %v2472_v4 = vld [vmem:[%s2461_s28 + $0x28] sm:$0xff]  ;;  %s2086_s26 = sshll.u32 %s493_s19, 3  ;;  %s3643_s14 = smov (!%p2072_p2, %s469_s14), 15  ;;  %v2493_v11 = vld [vmem:[%s2461_s28 + $0x30] sm:$0xff] }
  0x26   : > { %v516_v1 = vld [vmem:[%s2461_s28] sm:$0xff]  ;;  %v545_v2 = vsel %vm526_vm0, %v520_v0, 0.0  ;;  %v2476_v5 = vld [vmem:[%s2461_s28 + $0x8] sm:$0xff]  ;;  %s495_s0 = scalar_lea.vmem %s3529_s2, %s2086_s26  ;;  %v548_v6 = vsel %vm526_vm0, %v2472_v4, 0.0  ;;  %s2077_s27 = sshll.u32 %s3643_s14, 1  ;;  %v2496_v12 = vld [vmem:[%s2461_s28 + $0x38] sm:$0xff]  ;;  %v567_v29 = vadd.f32 %v2200_v25, %v566_v28 }
  0x27   : > { %v533_v3 = vsel %vm526_vm0, %v516_v1, 0.0  ;;  %546 = vadd.xlane.f32.xlu0 %v545_v2  ;;  %v2483_v7 = vld [vmem:[%s495_s0] sm:$0xff]  ;;  %v536_v8 = vsel %vm526_vm0, %v2476_v5, 0.0  ;;  %s476_s18 = sadd.s32 %s2077_s27, %s2448_s17  ;;  %v2490_v10 = vld [vmem:[%s495_s0 + $0x8] sm:$0xff]  ;;  %v551_v14 = vsel %vm526_vm0, %v2493_v11, 0.0  ;;  %v554_v15 = vsel %vm526_vm0, %v2496_v12, 0.0 }
  0x28   : > { %534 = vadd.xlane.f32.xlu1 %v533_v3  ;;  %v557_v9 = vsel %vm526_vm0, %v2483_v7, 0.0  ;;  %s2079_s24 = sshll.u32 %s476_s18, 3  ;;  %v560_v13 = vsel %vm526_vm0, %v2490_v10, 0.0  ;;  %v2512_v18 = vld [vmem:[%s2461_s28 + $0x10] sm:$0xff]  ;;  %v2521_v22 = vld [vmem:[%s2461_s28 + $0x18] sm:$0xff]  ;;  %v2525_v30 = vsel %vm568_vm1, %v2200_v25, %v567_v29  ;;  %s453_s17 = sand.u32 1, %s2295_s10  }
  0x29   : > { %558 = vadd.xlane.f32.xlu2 %v557_v9  ;;  %s478_s0 = scalar_lea.vmem %s3528_s1, %s2079_s24  ;;  %v539_v21 = vsel %vm526_vm0, %v2512_v18, 0.0  ;;  %v542_v23 = vsel %vm526_vm0, %v2521_v22, 0.0  ;;  %s2324_s29 = smov 120  }
  0x2a   : > { %v2507_v16 = vld [vmem:[%s478_s0] sm:$0xff]  ;;  %v2509_v17 = vld [vmem:[%s478_s0 + $0x8] sm:$0xff]  ;;  %s2839_s14 = scalar_select %p867_p4, 1, 0 }
  0x2b   : > { %v527_v19 = vsel %vm526_vm0, %v2507_v16, 0.0  ;;  %v530_v20 = vsel %vm526_vm0, %v2509_v17, 0.0  ;;  %s2883_s0 = scalar_select %p870_p5, 1, 0 }
  0x2c   : > { %s869_s15 = scvt.s32.f32 %s2839_s14  ;;  %s2090_s23 = sshll.u32 %s2455_s20, 2 }
  0x2d   : > { %s872_s28 = scvt.s32.f32 %s2883_s0  ;;  %s3433_s24 = scalar_lea.vmem %s3535_s8, %s2090_s23 }
  0x2e   : > { %s3457_s20 = scalar_lea.vmem [#allocation2], %s453_s17  ;;  %p2105_p6 = scmp.ne.s32.totalorder %s2303_s12, 0 }
  0x2f   : > { %549 = vadd.xlane.f32.xlu0 %v548_v6 }
  0x30   : > { %537 = vadd.xlane.f32.xlu1 %v536_v8 }
  0x31   : > { %561 = vadd.xlane.f32.xlu2 %v560_v13 }
  0x37   : > { %552 = vadd.xlane.f32.xlu0 %v551_v14 }
  0x38   : > { %555 = vadd.xlane.f32.xlu1 %v554_v15 }
  0x39   : > { %528 = vadd.xlane.f32.xlu2 %v527_v19 }
  0x3f   : > { %531 = vadd.xlane.f32.xlu0 %v530_v20 }
  0x40   : > { %540 = vadd.xlane.f32.xlu1 %v539_v21 }
  0x41   : > { %543 = vadd.xlane.f32.xlu2 %v542_v23 }
  0x9a   : > { %v547_v31 = vpop.xlane.xlu0 %546 }
  0x9b   : > { %v535_v32 = vpop.xlane.xlu1 %534  ;;  %v576_v33 = vmul.f32 %v2525_v30, %v547_v31 }
  0x9c   : > { %v572_v34 = vmul.f32 %v2525_v30, %v535_v32  ;;  %v559_v41 = vpop.xlane.xlu2 %558 }
  0x9d   : > { %v2529_v35 = vsub.f32 %v520_v0, %v576_v33  ;;  %v580_v60 = vmul.f32 %v2525_v30, %v559_v41 }
  0x9e   : > { %v2531_v36 = vsub.f32 %v516_v1, %v572_v34  ;;  %v798_v34 = vld [vmem:[%s3532_s5] sm:$0xf] }
  0x9f   : > { %v600_v37 = vmul.f32 %v2529_v35, %v2529_v35  ;;  %v2575_v3 = vsub.f32 %v2483_v7, %v580_v60 }
  0xa0   : > { %v596_v38 = vmul.f32 %v2531_v36, %v2531_v36 }
  0xa1   : > { %v624_v39 = vsel %vm526_vm0, %v600_v37, 0.0  ;;  %v604_v13 = vmul.f32 %v2575_v3, %v2575_v3  ;;  %v826_v37 = vsel %vm824_vm2, %v798_v34, 0 }
  0xa2   : > { %v612_v40 = vsel %vm526_vm0, %v596_v38, 0.0  ;;  %625 = vadd.xlane.f32.xlu0 %v624_v39  ;;  %v550_v42 = vpop.xlane.xlu0 %549  ;;  %2118 = vmatpush.bf16.msra.mxu1 %v826_v37 }
  0xa3   : > { %613 = vadd.xlane.f32.xlu2 %v612_v40  ;;  %v577_v43 = vmul.f32 %v2525_v30, %v550_v42  ;;  %v538_v44 = vpop.xlane.xlu1 %537  ;;  %2119 = vmatpush.bf16.msra.mxu2 %v826_v37 }
  0xa4   : > { %v573_v45 = vmul.f32 %v2525_v30, %v538_v44  ;;  %v562_v51 = vpop.xlane.xlu2 %561  ;;  %835 = vmatpush.bf16.msra.mxu0 %v826_v37  ;;  %2120 = vmatpush.bf16.msra.mxu3 %v826_v37 }
  0xa5   : > { %v2542_v46 = vsub.f32 %v2472_v4, %v577_v43  ;;  %v581_v54 = vmul.f32 %v2525_v30, %v562_v51 }
  0xa6   : > { %v2545_v47 = vsub.f32 %v2476_v5, %v573_v45 }
  0xa7   : > { %v601_v48 = vmul.f32 %v2542_v46, %v2542_v46  ;;  %v2557_v58 = vsub.f32 %v2490_v10, %v581_v54 }
  0xa8   : > { %v597_v49 = vmul.f32 %v2545_v47, %v2545_v47 }
  0xa9   : > { %v627_v50 = vsel %vm526_vm0, %v601_v48, 0.0  ;;  %v605_v62 = vmul.f32 %v2557_v58, %v2557_v58 }
  0xaa   : > { %v553_v52 = vpop.xlane.xlu0 %552  ;;  %628 = vadd.xlane.f32.xlu1 %v627_v50  ;;  %v615_v53 = vsel %vm526_vm0, %v597_v49, 0.0 }
  0xab   : > { %v578_v55 = vmul.f32 %v2525_v30, %v553_v52  ;;  %616 = vadd.xlane.f32.xlu0 %v615_v53  ;;  %v556_v56 = vpop.xlane.xlu1 %555  ;;  %v639_v1 = vsel %vm526_vm0, %v605_v62, 0.0 }
  0xac   : > { %v579_v57 = vmul.f32 %v2525_v30, %v556_v56  ;;  %v529_v4 = vpop.xlane.xlu2 %528  ;;  %640 = vadd.xlane.f32.xlu2 %v639_v1 }
  0xad   : > { %v2560_v59 = vsub.f32 %v2493_v11, %v578_v55  ;;  %v570_v8 = vmul.f32 %v2525_v30, %v529_v4 }
  0xae   : > { %v2564_v61 = vsub.f32 %v2496_v12, %v579_v57 }
  0xaf   : > { %v602_v63 = vmul.f32 %v2560_v59, %v2560_v59  ;;  %v2582_v12 = vsub.f32 %v2507_v16, %v570_v8 }
  0xb0   : > { %v603_v0 = vmul.f32 %v2564_v61, %v2564_v61 }
  0xb1   : > { %v630_v2 = vsel %vm526_vm0, %v602_v63, 0.0  ;;  %v594_v14 = vmul.f32 %v2582_v12, %v2582_v12 }
  0xb2   : > { %v532_v5 = vpop.xlane.xlu0 %531  ;;  %v633_v6 = vsel %vm526_vm0, %v603_v0, 0.0 }
  0xb3   : > { %v571_v9 = vmul.f32 %v2525_v30, %v532_v5  ;;  %631 = vadd.xlane.f32.xlu0 %v630_v2  ;;  %634 = vadd.xlane.f32.xlu1 %v633_v6  ;;  %v541_v10 = vpop.xlane.xlu1 %540  ;;  %v606_v20 = vsel %vm526_vm0, %v594_v14, 0.0 }
  0xb4   : > { %v574_v11 = vmul.f32 %v2525_v30, %v541_v10  ;;  %v544_v21 = vpop.xlane.xlu2 %543  ;;  %607 = vadd.xlane.f32.xlu2 %v606_v20 }
  0xb5   : > { %v2585_v7 = vsub.f32 %v2509_v17, %v571_v9  ;;  %v636_v17 = vsel %vm526_vm0, %v604_v13, 0.0  ;;  %v575_v23 = vmul.f32 %v2525_v30, %v544_v21 }
  0xb6   : > { %v2594_v19 = vsub.f32 %v2512_v18, %v574_v11 }
  0xb7   : > { %v595_v15 = vmul.f32 %v2585_v7, %v2585_v7  ;;  %v2603_v25 = vsub.f32 %v2521_v22, %v575_v23 }
  0xb8   : > { %v598_v24 = vmul.f32 %v2594_v19, %v2594_v19 }
  0xb9   : > { %v609_v16 = vsel %vm526_vm0, %v595_v15, 0.0  ;;  %v599_v18 = vmul.f32 %v2603_v25, %v2603_v25 }
  0xba   : > { %v618_v26 = vsel %vm526_vm0, %v598_v24, 0.0 }
  0xbb   : > { %610 = vadd.xlane.f32.xlu0 %v609_v16  ;;  %637 = vadd.xlane.f32.xlu1 %v636_v17  ;;  %v621_v27 = vsel %vm526_vm0, %v599_v18, 0.0 }
  0xbc   : > { %622 = vadd.xlane.f32.xlu2 %v621_v27 }
  0xc3   : > { %619 = vadd.xlane.f32.xlu1 %v618_v26 }
 0x115   : > { %v626_v28 = vpop.xlane.xlu0 %625 }
 0x116   : > { %v614_v29 = vpop.xlane.xlu2 %613  ;;  %v648_v31 = vmul.f32 %v626_v28, %v2525_v30 }
 0x117   : > { %v644_v32 = vmul.f32 %v614_v29, %v2525_v30 }
 0x118   : > { %v2612_v33 = vadd.f32 1e-06, %v648_v31 }
 0x119   : > { %v2614_v22 = vadd.f32 1e-06, %v644_v32 }
 0x11a   : > { %2201 = vrsqrt.f32 %v2612_v33  ;;  %vm732_vm3 = vweird.f32 %v2612_v33 }
 0x11b   : > { %2203 = vrsqrt.f32 %v2614_v22  ;;  %vm692_vm4 = vweird.f32 %v2614_v22 }
 0x11d   : > { %v629_v38 = vpop.xlane.xlu1 %628 }
 0x11e   : > { %v617_v39 = vpop.xlane.xlu0 %616  ;;  %v649_v40 = vmul.f32 %v629_v38, %v2525_v30 }
 0x11f   : > { %v645_v41 = vmul.f32 %v617_v39, %v2525_v30  ;;  %v641_v51 = vpop.xlane.xlu2 %640 }
 0x120   : > { %v2624_v42 = vpop.eup %2201  ;;  %v2626_v43 = vadd.f32 1e-06, %v649_v40  ;;  %v653_v53 = vmul.f32 %v641_v51, %v2525_v30 }
 0x121   : > { %v2628_v44 = vpop.eup %2203  ;;  %v657_v45 = vadd.f32 1e-06, %v645_v41  ;;  %v727_v49 = vmul.f32 %v2624_v42, %v2612_v33  ;;  %vm733_vm10 = vweird.f32 %v2624_v42 }
 0x122   : > { %v687_v48 = vmul.f32 %v2628_v44, %v2614_v22  ;;  %2205 = vrsqrt.f32 %v2626_v43  ;;  %v2641_v62 = vadd.f32 1e-06, %v653_v53  ;;  %vm693_vm5 = vweird.f32 %v2628_v44  ;;  %vm2714_vm14 = vmor %vm732_vm3, %vm733_vm10 }
 0x123   : > { %2207 = vrsqrt.f32 %v657_v45  ;;  %v728_v56 = vmul.f32 %v2624_v42, %v727_v49  ;;  %vm702_vm6 = vweird.f32 %v657_v45  ;;  %vm2671_vm8 = vmor %vm692_vm4, %vm693_vm5  ;;  %vm742_vm12 = vweird.f32 %v2626_v43 }
 0x124   : > { %v688_v50 = vmul.f32 %v2628_v44, %v687_v48  ;;  %2209 = vrsqrt.f32 %v2641_v62  ;;  %vm782_vm15 = vweird.f32 %v2641_v62 }
 0x125   : > { %v729_v6 = vmul.f32 0.5, %v728_v56 }
 0x126   : > { %v689_v52 = vmul.f32 0.5, %v688_v50  ;;  %v632_v54 = vpop.xlane.xlu0 %631  ;;  %v635_v55 = vpop.xlane.xlu1 %634 }
 0x127   : > { %v650_v57 = vmul.f32 %v632_v54, %v2525_v30  ;;  %v651_v63 = vmul.f32 %v635_v55, %v2525_v30  ;;  %v608_v13 = vpop.xlane.xlu2 %607  ;;  %v730_v17 = vsub.f32 1.5, %v729_v6 }
 0x128   : > { %v2639_v60 = vpop.eup %2205  ;;  %v690_v4 = vsub.f32 1.5, %v689_v52  ;;  %v642_v20 = vmul.f32 %v608_v13, %v2525_v30 }
 0x129   : > { %v2208_v0 = vpop.eup %2207  ;;  %v737_v1 = vmul.f32 %v2639_v60, %v2626_v43  ;;  %v2646_v2 = vadd.f32 1e-06, %v650_v57  ;;  %v2651_v10 = vadd.f32 1e-06, %v651_v63  ;;  %vm743_vm9 = vweird.f32 %v2639_v60 }
 0x12a   : > { %v697_v5 = vmul.f32 %v2208_v0, %v657_v45  ;;  %v691_v14 = vmul.f32 %v2628_v44, %v690_v4  ;;  %v2660_v18 = vpop.eup %2209  ;;  %vm703_vm7 = vweird.f32 %v2208_v0  ;;  %v2662_v27 = vadd.f32 1e-06, %v642_v20  ;;  %vm2695_vm13 = vmor %vm742_vm12, %vm743_vm9 }
 0x12b   : > { %v738_v8 = vmul.f32 %v2639_v60, %v737_v1  ;;  %2211 = vrsqrt.f32 %v2646_v2  ;;  %v777_v34 = vmul.f32 %v2660_v18, %v2641_v62  ;;  %v731_v40 = vmul.f32 %v2624_v42, %v730_v17  ;;  %vm704_vm11 = vmor %vm702_vm6, %vm703_vm7 }
 0x12c   : > { %v698_v9 = vmul.f32 %v2208_v0, %v697_v5  ;;  %2213 = vrsqrt.f32 %v2651_v10  ;;  %v695_v22 = vsel %vm2671_vm8, %v2628_v44, %v691_v14  ;;  %vm783_vm1 = vweird.f32 %v2660_v18 }
 0x12d   : > { %v739_v11 = vmul.f32 0.5, %v738_v8  ;;  %2215 = vrsqrt.f32 %v2662_v27  ;;  %v778_v49 = vmul.f32 %v2660_v18, %v777_v34  ;;  %v788_v43 = vmul.f32 %v695_v22, %v2531_v36  ;;  %vm2755_vm9 = vmor %vm782_vm15, %vm783_vm1 }
 0x12e   : > { %v699_v15 = vmul.f32 0.5, %v698_v9  ;;  %v611_v16 = vpop.xlane.xlu0 %610  ;;  %v638_v21 = vpop.xlane.xlu1 %637  ;;  %vm752_vm3 = vweird.f32 %v2646_v2  ;;  %vm672_vm5 = vweird.f32 %v2662_v27  ;;  %vm762_vm12 = vweird.f32 %v2651_v10 }
 0x12f   : > { %v740_v23 = vsub.f32 1.5, %v739_v11  ;;  %v643_v24 = vmul.f32 %v611_v16, %v2525_v30  ;;  %v652_v28 = vmul.f32 %v638_v21, %v2525_v30  ;;  %v623_v52 = vpop.xlane.xlu2 %622  ;;  %v779_v33 = vmul.f32 0.5, %v778_v49 }
 0x130   : > { %v700_v26 = vsub.f32 1.5, %v699_v15  ;;  %v647_v56 = vmul.f32 %v623_v52, %v2525_v30 }
 0x131   : > { %v2665_v29 = vpop.eup %2211  ;;  %v741_v32 = vmul.f32 %v2639_v60, %v740_v23  ;;  %v2679_v37 = vadd.f32 1e-06, %v643_v24  ;;  %v2701_v50 = vadd.f32 1e-06, %v652_v28  ;;  %v780_v14 = vsub.f32 1.5, %v779_v33 }
 0x132   : > { %v701_v38 = vmul.f32 %v2208_v0, %v700_v26  ;;  %v747_v39 = vmul.f32 %v2665_v29, %v2646_v2  ;;  %v2693_v41 = vpop.eup %2213  ;;  %v2727_v4 = vadd.f32 1e-06, %v647_v56  ;;  %vm753_vm4 = vweird.f32 %v2665_v29 }
 0x133   : > { %2217 = vrsqrt.f32 %v2679_v37  ;;  %v757_v45 = vmul.f32 %v2693_v41, %v2651_v10  ;;  %v745_v54 = vsel %vm2695_vm13, %v2639_v60, %v741_v32  ;;  %v735_v60 = vsel %vm2714_vm14, %v2624_v42, %v731_v40 }
 0x134   : > { %v748_v44 = vmul.f32 %v2665_v29, %v747_v39  ;;  %v705_v51 = vsel %vm704_vm11, %v2208_v0, %v701_v38  ;;  %2219 = vrsqrt.f32 %v2701_v50  ;;  %v2725_v0 = vpop.eup %2215  ;;  %v793_v5 = vmul.f32 %v745_v54, %v2542_v46  ;;  %vm2764_vm11 = vmor %vm752_vm3, %vm753_vm4 }
 0x135   : > { %v789_v53 = vmul.f32 %v705_v51, %v2545_v47  ;;  %v758_v36 = vmul.f32 %v2693_v41, %v757_v45  ;;  %v667_v9 = vmul.f32 %v2725_v0, %v2662_v27  ;;  %2221 = vrsqrt.f32 %v2727_v4 }
 0x136   : > { %v620_v57 = vpop.xlane.xlu1 %619  ;;  %v749_v1 = vmul.f32 0.5, %v748_v44  ;;  %v792_v42 = vmul.f32 %v735_v60, %v2529_v35  ;;  %vm682_vm6 = vweird.f32 %v2679_v37  ;;  %vm763_vm7 = vweird.f32 %v2693_v41 }
 0x137   : > { %v646_v47 = vmul.f32 %v620_v57, %v2525_v30  ;;  %v800_v63 = vpack.c.bf16 %v789_v53, %v788_v43  ;;  %v759_v8 = vmul.f32 0.5, %v758_v36  ;;  %v668_v46 = vmul.f32 %v2725_v0, %v667_v9  ;;  %vm2789_vm1 = vmor %vm762_vm12, %vm763_vm7  ;;  %v1046_v9 = vld [vmem:[%s3533_s6] sm:$0xf] }
 0x138   : > { %v750_v15 = vsub.f32 1.5, %v749_v1  ;;  %v802_v16 = vpack.c.bf16 %v793_v5, %v792_v42  ;;  %vm673_vm8 = vweird.f32 %v2725_v0  ;;  %v781_v31 = vmul.f32 %v2660_v18, %v780_v14  ;;  %v2826_v42 = vld [vmem:[%s3530_s3] ss:$0 sm:$0xff] }
 0x139   : > { %v2218_v6 = vpop.eup %2217  ;;  %2092 = vmatmul.msk.bf16.vlgmr.msra.gmra.mxu1 %vm526_vm0, %v800_v63  ;;  %v2740_v11 = vadd.f32 1e-06, %v646_v47  ;;  %v760_v21 = vsub.f32 1.5, %v759_v8  ;;  %v669_v17 = vmul.f32 0.5, %v668_v46  ;;  %vm2774_vm13 = vmor %vm672_vm5, %vm673_vm8  ;;  %vm772_vm3 = vweird.f32 %v2701_v50 }
 0x13a   : > { %v677_v30 = vmul.f32 %v2218_v6, %v2679_v37  ;;  %v2220_v13 = vpop.eup %2219  ;;  %2094 = vmatmul.msk.bf16.vlgmr.msra.gmra.mxu2 %vm526_vm0, %v802_v16  ;;  %v751_v34 = vmul.f32 %v2665_v29, %v750_v15  ;;  %vm683_vm10 = vweird.f32 %v2218_v6  ;;  %v785_v53 = vsel %vm2755_vm9, %v2660_v18, %v781_v31 }
 0x13b   : > { %v767_v23 = vmul.f32 %v2220_v13, %v2701_v50  ;;  %2223 = vrsqrt.f32 %v2740_v11  ;;  %v670_v24 = vsub.f32 1.5, %v669_v17  ;;  %v2222_v28 = vpop.eup %2221  ;;  %v761_v22 = vmul.f32 %v2693_v41, %v760_v21  ;;  %vm2780_vm14 = vmor %vm682_vm6, %vm683_vm10 }
 0x13c   : > { %v678_v20 = vmul.f32 %v2218_v6, %v677_v30  ;;  %v717_v48 = vmul.f32 %v2222_v28, %v2727_v4  ;;  %vm773_vm15 = vweird.f32 %v2220_v13  ;;  %v755_v43 = vsel %vm2764_vm11, %v2665_v29, %v751_v34 }
 0x13d   : > { %v768_v26 = vmul.f32 %v2220_v13, %v767_v23  ;;  %v671_v62 = vmul.f32 %v2725_v0, %v670_v24  ;;  %v765_v57 = vsel %vm2789_vm1, %v2693_v41, %v761_v22  ;;  %vm774_vm4 = vmor %vm772_vm3, %vm773_vm15  ;;  %v794_v29 = vmul.f32 %v755_v43, %v2560_v59  ;;  %v1047_v23 = vld [vmem:[%s3533_s6 + $0x4] sm:$0x1] }
 0x13e   : > { %v679_v35 = vmul.f32 0.5, %v678_v20  ;;  %v718_v45 = vmul.f32 %v2222_v28, %v717_v48  ;;  %v795_v18 = vmul.f32 %v765_v57, %v2564_v61  ;;  %v797_v1 = vmul.f32 %v785_v53, %v2557_v58 }
 0x13f   : > { %v769_v40 = vmul.f32 0.5, %v768_v26  ;;  %v675_v10 = vsel %vm2774_vm13, %v2725_v0, %v671_v62  ;;  %vm722_vm5 = vweird.f32 %v2727_v4  ;;  %vm723_vm6 = vweird.f32 %v2222_v28 }
 0x140   : > { %v680_v38 = vsub.f32 1.5, %v679_v35  ;;  %v719_v55 = vmul.f32 0.5, %v718_v45  ;;  %v786_v50 = vmul.f32 %v675_v10, %v2582_v12  ;;  %vm712_vm7 = vweird.f32 %v2740_v11  ;;  %vm724_vm9 = vmor %vm722_vm5, %vm723_vm6 }
 0x141   : > { %v770_v51 = vsub.f32 1.5, %v769_v40  ;;  %v2224_v52 = vpop.eup %2223  ;;  %v803_v59 = vpack.c.bf16 %v795_v18, %v794_v29  ;;  %v1049_v30 = vshrl.u32 %v1046_v9, 16  ;;  %v1393_v62 = vpack.i.b16 %v1047_v23, %v1047_v23 }
 0x142   : > { %v681_v2 = vmul.f32 %v2218_v6, %v680_v38  ;;  %v707_v56 = vmul.f32 %v2224_v52, %v2740_v11  ;;  %v720_v47 = vsub.f32 1.5, %v719_v55  ;;  %vm713_vm8 = vweird.f32 %v2224_v52 }
 0x143   : > { %v771_v54 = vmul.f32 %v2220_v13, %v770_v51  ;;  %vm714_vm10 = vmor %vm712_vm7, %vm713_vm8  ;;  %v1050_v11 = vpack.i.b16 %v1049_v30, %v1049_v30  ;;  %vm1800_vm7 = vcmask 60416  }
 0x144   : > { %v685_v37 = vsel %vm2780_vm14, %v2218_v6, %v681_v2  ;;  %v708_v63 = vmul.f32 %v2224_v52, %v707_v56  ;;  %v721_v5 = vmul.f32 %v2222_v28, %v720_v47  ;;  %v1395_v47 = vperm.slane %v1393_v62, 0 }
 0x145   : > { %v787_v36 = vmul.f32 %v685_v37, %v2585_v7  ;;  %v775_v60 = vsel %vm774_vm4, %v2220_v13, %v771_v54  ;;  %v1078_v13 = vpack.i.b16 %v1046_v9, %v1046_v9  ;;  %v1052_v15 = vperm.slane %v1050_v11, 0 }
 0x146   : > { %v796_v33 = vmul.f32 %v775_v60, %v2575_v3  ;;  %v709_v41 = vmul.f32 0.5, %v708_v63  ;;  %v725_v3 = vsel %vm724_vm9, %v2222_v28, %v721_v5  ;;  %v1132_v16 = vperm.slane %v1050_v11, 3 }
 0x147   : > { %v799_v0 = vpack.c.bf16 %v787_v36, %v786_v50  ;;  %v791_v6 = vmul.f32 %v725_v3, %v2603_v25  ;;  %v873_v25 = vlaneseq  ;;  %v1080_v20 = vperm.slane %v1078_v13, 2 }
 0x148   : > { %v804_v12 = vpack.c.bf16 %v797_v1, %v796_v33  ;;  %v710_v7 = vsub.f32 1.5, %v709_v41  ;;  %v1184_v17 = vperm.slane %v1078_v13, 0  ;;  %v2841_v24 = vunpack.c.l.bf16 %v1052_v15 }
 0x149   : > { %2091 = vmatmul.msk.bf16.vlgmr.msra.gmra.mxu0 %vm526_vm0, %v799_v0  ;;  %v2834_v21 = vshrl.u32 %v873_v25, 7  ;;  %v2843_v26 = vunpack.c.l.bf16 %v1080_v20  ;;  %v2845_v28 = vunpack.c.l.bf16 %v1132_v16  ;;  %v1210_v34 = vperm.slane %v1050_v11, 1 }
 0x14a   : > { %2096 = vmatmul.msk.bf16.vlgmr.msra.gmra.mxu3 %vm526_vm0, %v804_v12  ;;  %v711_v61 = vmul.f32 %v2224_v52, %v710_v7  ;;  %2095 = vmatmul.msk.bf16.gmra.mxu2 %vm526_vm0, %v803_v59  ;;  %v2853_v38 = vunpack.c.l.bf16 %v1184_v17  ;;  %v1314_v39 = vperm.slane %v1078_v13, 1  ;;  %v1340_v22 = vperm.slane %v1050_v11, 2 }
 0x14b   : > { %vm972_vm11 = vcmp.lt.s32.totalorder %v2834_v21, 1  ;;  %vm997_vm12 = vcmp.lt.s32.totalorder %v2834_v21, 7  ;;  %v2879_v53 = vunpack.c.l.bf16 %v1210_v34  ;;  %v2891_v63 = vstv %s869_s15 }
 0x14c   : > { %v715_v58 = vsel %vm714_vm10, %v2224_v52, %v711_v61  ;;  %v1262_v52 = vperm.slane %v1078_v13, 3  ;;  %v2887_v56 = vunpack.c.l.bf16 %v1314_v39  ;;  %v2889_v57 = vunpack.c.l.bf16 %v1340_v22 }
 0x14d   : > { %v790_v4 = vmul.f32 %v715_v58, %v2594_v19  ;;  %v2904_v13 = vunpack.c.l.bf16 %v1395_v47  ;;  %v2911_v20 = vstv %s872_s28 }
 0x14e   : > { %v2893_v18 = vunpack.c.l.bf16 %v1262_v52 }
 0x14f   : > { %v801_v8 = vpack.c.bf16 %v791_v6, %v790_v4 }
 0x151   : > { %2093 = vmatmul.msk.bf16.gmra.mxu1 %vm526_vm0, %v801_v8 }
 0x1b6   : > { %v842_v46 = vpop.f32.mrf.mxu1 }
 0x1b7   : > { %v2829_v19 = vadd.f32 %v2826_v42, %v842_v46 }
 0x1b9   : > { %v1012_v14 = vpack.c.bf16 %v2829_v19, %v2829_v19  ;;  %v962_v40 = vrot.slane %v2829_v19, 7  ;;  %v987_v48 = vrot.slane %v2829_v19, 1 }
 0x1bb   : > { %v1055_v35 = vunpack.c.l.bf16 %v1012_v14 }
 0x1bd   : > { %v852_v49 = vpop.f32.mrf.mxu2  ;;  %v1064_v51 = vmul.f32 %v2841_v24, %v1055_v35  ;;  %v1084_v27 = vmul.f32 %v2843_v26, %v1055_v35 }
 0x1be   : > { %v844_v31 = vpop.f32.mrf.mxu1  ;;  %v2862_v45 = vadd.f32 %v2826_v42, %v852_v49 }
 0x1bf   : > { %v2848_v32 = vadd.f32 %v2826_v42, %v844_v31  ;;  %v1072_v29 = vpack.c.bf16 %v1064_v51, %v1064_v51  ;;  %v1092_v33 = vpack.c.bf16 %v1084_v27, %v1084_v27 }
 0x1c0   : > { %v1016_v54 = vpack.c.bf16 %v2862_v45, %v2862_v45  ;;  %v3541_v15 = vrot.slane %v2862_v45, 7  ;;  %v3540_v16 = vrot.slane %v2862_v45, 1 }
 0x1c1   : > { %v3545_v2 = vrot.slane %v2848_v32, 7  ;;  %v3543_v44 = vrot.slane %v2848_v32, 1  ;;  %v1013_v10 = vpack.c.bf16 %v2848_v32, %v2848_v32  ;;  %v2906_v25 = vunpack.c.l.bf16 %v1072_v29 }
 0x1c2   : > { %v1059_v60 = vunpack.c.l.bf16 %v1016_v54  ;;  %v2908_v14 = vunpack.c.l.bf16 %v1092_v33 }
 0x1c3   : > { %v981_v37 = vsel %vm972_vm11, %v962_v40, %v3545_v2  ;;  %v1006_v43 = vsel %vm997_vm12, %v987_v48, %v3543_v44  ;;  %v1056_v36 = vunpack.c.l.bf16 %v1013_v10 }
 0x1c4   : > { %v1025_v55 = vpack.c.bf16 %v981_v37, %v981_v37  ;;  %v1036_v50 = vpack.c.bf16 %v1006_v43, %v1006_v43  ;;  %v1068_v7 = vmul.f32 %v2841_v24, %v1059_v60  ;;  %v1088_v59 = vmul.f32 %v2843_v26, %v1059_v60 }
 0x1c5   : > { %v1065_v1 = vmul.f32 %v2841_v24, %v1056_v36  ;;  %v1085_v5 = vmul.f32 %v2843_v26, %v1056_v36  ;;  %v1138_v61 = vmul.f32 %v2845_v28, %v1059_v60  ;;  %v854_v9 = vpop.f32.mrf.mxu2 }
 0x1c6   : > { %v1188_v0 = vunpack.c.l.bf16 %v1025_v55  ;;  %v1317_v41 = vunpack.c.l.bf16 %v1036_v50  ;;  %v837_v12 = vpop.f32.mrf.mxu0  ;;  %v1076_v30 = vpack.c.bf16 %v1068_v7, %v1068_v7  ;;  %v1096_v46 = vpack.c.bf16 %v1088_v59, %v1088_v59 }
 0x1c7   : > { %v1073_v58 = vpack.c.bf16 %v1065_v1, %v1065_v1  ;;  %v1093_v4 = vpack.c.bf16 %v1085_v5, %v1085_v5  ;;  %v1146_v11 = vpack.c.bf16 %v1138_v61, %v1138_v61  ;;  %v2920_v22 = vadd.f32 %v2826_v42, %v854_v9 }
 0x1c8   : > { %v1197_v3 = vmul.f32 %v2853_v38, %v1188_v0  ;;  %v1215_v6 = vmul.f32 %v2879_v53, %v1188_v0  ;;  %v1326_v8 = vmul.f32 %v2887_v56, %v1317_v41  ;;  %v1344_v39 = vmul.f32 %v2889_v57, %v1317_v41 }
 0x1c9   : > { %v2914_v31 = vunpack.c.l.bf16 %v1073_v58  ;;  %v2916_v34 = vunpack.c.l.bf16 %v1093_v4  ;;  %v2922_v62 = vunpack.c.l.bf16 %v1076_v30  ;;  %v2924_v49 = vunpack.c.l.bf16 %v1096_v46 }
 0x1ca   : > { %v1205_v17 = vpack.c.bf16 %v1197_v3, %v1197_v3  ;;  %v1223_v23 = vpack.c.bf16 %v1215_v6, %v1215_v6  ;;  %v1334_v35 = vpack.c.bf16 %v1326_v8, %v1326_v8  ;;  %v2926_v51 = vunpack.c.l.bf16 %v1146_v11 }
 0x1cb   : > { %v838_v10 = vadd.f32 %v2826_v42, %v837_v12  ;;  %v1352_v52 = vpack.c.bf16 %v1344_v39, %v1344_v39  ;;  %v967_v27 = vrot.slane %v2920_v22, 7  ;;  %v992_v37 = vrot.slane %v2920_v22, 1 }
 0x1cc   : > { %v1017_v43 = vpack.c.bf16 %v2920_v22, %v2920_v22  ;;  %v2933_v50 = vunpack.c.l.bf16 %v1205_v17  ;;  %v2935_v36 = vunpack.c.l.bf16 %v1223_v23  ;;  %v2937_v47 = vunpack.c.l.bf16 %v1334_v35 }
 0x1cd   : > { %v862_v54 = vpop.f32.mrf.mxu3  ;;  %v2940_v29 = vmul.f32 %v2891_v63, %v838_v10  ;;  %v977_v60 = vsel %vm972_vm11, %v3541_v15, %v967_v27  ;;  %v1002_v0 = vsel %vm997_vm12, %v3540_v16, %v992_v37  ;;  %v857_v1 = vpop.f32.mrf.mxu2  ;;  %v2951_v41 = vunpack.c.l.bf16 %v1352_v52 }
 0x1ce   : > { %v839_v55 = vpop.f32.mrf.mxu0  ;;  %v1060_v33 = vunpack.c.l.bf16 %v1017_v43  ;;  %v863_v5 = vadd.f32 %v2826_v42, %v862_v54  ;;  %v1029_v12 = vpack.c.bf16 %v977_v60, %v977_v60  ;;  %v1040_v7 = vpack.c.bf16 %v1002_v0, %v1002_v0 }
 0x1cf   : > { %3577 = vst [vmem:[#allocation9_spill] sm:$0xff] %v2951_v41  ;;  %v840_v59 = vadd.f32 %v2826_v42, %v839_v55  ;;  %v1010_v4 = vpack.c.bf16 %v2940_v29, %v2940_v29  ;;  %v3546_v9 = vrot.slane %v2940_v29, 7  ;;  %v2961_v30 = vadd.f32 %v2826_v42, %v857_v1 }
 0x1d0   : > { %v1069_v61 = vmul.f32 %v2841_v24, %v1060_v33  ;;  %v1089_v3 = vmul.f32 %v2843_v26, %v1060_v33  ;;  %v1139_v58 = vmul.f32 %v2845_v28, %v1060_v33  ;;  %v1192_v6 = vunpack.c.l.bf16 %v1029_v12 }
 0x1d1   : > { %v1321_v8 = vunpack.c.l.bf16 %v1040_v7  ;;  %v1053_v23 = vunpack.c.l.bf16 %v1010_v4  ;;  %v3550_v54 = vrot.slane %v2940_v29, 1  ;;  %v2972_v55 = vmul.f32 %v2911_v20, %v863_v5 }
 0x1d2   : > { %v1077_v46 = vpack.c.bf16 %v1069_v61, %v1069_v61  ;;  %v1097_v11 = vpack.c.bf16 %v1089_v3, %v1089_v3  ;;  %v1147_v17 = vpack.c.bf16 %v1139_v58, %v1139_v58  ;;  %v1201_v35 = vmul.f32 %v2853_v38, %v1192_v6 }
 0x1d3   : > { %v1219_v39 = vmul.f32 %v2879_v53, %v1192_v6  ;;  %v1269_v22 = vmul.f32 %v2893_v18, %v1192_v6  ;;  %v1330_v10 = vmul.f32 %v2887_v56, %v1321_v8  ;;  %v1348_v43 = vmul.f32 %v2889_v57, %v1321_v8 }
 0x1d4   : > { %v2967_v52 = vunpack.c.l.bf16 %v1077_v46  ;;  %v1209_v60 = vpack.c.bf16 %v1201_v35, %v1201_v35  ;;  %v2975_v7 = vmul.f32 %v2904_v13, %v1321_v8  ;;  %v1062_v61 = vmul.f32 %v2841_v24, %v1053_v23 }
 0x1d5   : > { %v1227_v0 = vpack.c.bf16 %v1219_v39, %v1219_v39  ;;  %v1277_v33 = vpack.c.bf16 %v1269_v22, %v1269_v22  ;;  %v1338_v1 = vpack.c.bf16 %v1330_v10, %v1330_v10  ;;  %v1356_v12 = vpack.c.bf16 %v1348_v43, %v1348_v43 }
 0x1d6   : > { %v3542_v3 = vrot.slane %v2961_v30, 7  ;;  %v2979_v58 = vunpack.c.l.bf16 %v1097_v11  ;;  %v2981_v4 = vunpack.c.l.bf16 %v1147_v17  ;;  %v2983_v6 = vunpack.c.l.bf16 %v1209_v60 }
 0x1d7   : > { %v2985_v5 = vunpack.c.l.bf16 %v1227_v0  ;;  %v2987_v46 = vunpack.c.l.bf16 %v1277_v33  ;;  %v2989_v35 = vunpack.c.l.bf16 %v1338_v1  ;;  %v1070_v39 = vpack.c.bf16 %v1062_v61, %v1062_v61 }
 0x1d8   : > { %3578 = vst [vmem:[#allocation10_spill] sm:$0xff] %v2981_v4  ;;  %v976_v8 = vsel %vm972_vm11, %v967_v27, %v3542_v3  ;;  %v2995_v23 = vunpack.c.l.bf16 %v1356_v12  ;;  %v3544_v11 = vrot.slane %v2961_v30, 1  ;;  %v1018_v17 = vpack.c.bf16 %v2961_v30, %v2961_v30  ;;  %v847_v3 = vpop.f32.mrf.mxu1 }
 0x1d9   : > { %3579 = vst [vmem:[#allocation11_spill] sm:$0xff] %v2987_v46  ;;  %v1030_v22 = vpack.c.bf16 %v976_v8, %v976_v8  ;;  %v1100_v43 = vunpack.c.l.bf16 %v1070_v39  ;;  %v1020_v60 = vpack.c.bf16 %v2972_v55, %v2972_v55  ;;  %v949_v0 = vmul.f32 %v2891_v63, %v840_v59 }
 0x1da   : > { %3580 = vst [vmem:[#allocation12_spill] sm:$0xff] %v2995_v23  ;;  %v1001_v27 = vsel %vm997_vm12, %v992_v37, %v3544_v11  ;;  %v1081_v33 = vunpack.c.l.bf16 %v1018_v17 }
 0x1db   : > { %v1211_v1 = vunpack.c.l.bf16 %v1030_v22  ;;  %v1116_v61 = vadd.f32 %v2908_v14, %v1100_v43  ;;  %v1041_v8 = vpack.c.bf16 %v1001_v27, %v1001_v27  ;;  %v1133_v16 = vunpack.c.l.bf16 %v1020_v60 }
 0x1dc   : > { %v961_v10 = vrot.slane %v949_v0, 7  ;;  %v1090_v39 = vmul.f32 %v2843_v26, %v1081_v33  ;;  %v1140_v15 = vmul.f32 %v2845_v28, %v1081_v33 }
 0x1dd   : > { %v1220_v63 = vmul.f32 %v2879_v53, %v1211_v1  ;;  %v1270_v59 = vmul.f32 %v2893_v18, %v1211_v1  ;;  %v1124_v44 = vpack.c.bf16 %v1116_v61, %v1116_v61  ;;  %v1322_v37 = vunpack.c.l.bf16 %v1041_v8 }
 0x1de   : > { %v1142_v22 = vmul.f32 %v2845_v28, %v1133_v16  ;;  %v1098_v11 = vpack.c.bf16 %v1090_v39, %v1090_v39  ;;  %v1148_v14 = vpack.c.bf16 %v1140_v15, %v1140_v15  ;;  %v3023_v1 = vadd.f32 %v2826_v42, %v847_v3 }
 0x1df   : > { %v1228_v43 = vpack.c.bf16 %v1220_v63, %v1220_v63  ;;  %v1278_v60 = vpack.c.bf16 %v1270_v59, %v1270_v59  ;;  %v1331_v27 = vmul.f32 %v2887_v56, %v1322_v37  ;;  %v1349_v12 = vmul.f32 %v2889_v57, %v1322_v37 }
 0x1e0   : > { %v3020_v33 = vmul.f32 %v2904_v13, %v1322_v37  ;;  %v3025_v61 = vunpack.c.l.bf16 %v1124_v44  ;;  %v1114_v8 = vunpack.c.l.bf16 %v1098_v11  ;;  %v3027_v17 = vunpack.c.l.bf16 %v1148_v14 }
 0x1e1   : > { %v982_v15 = vsel %vm972_vm11, %v961_v10, %v962_v40  ;;  %v3033_v16 = vunpack.c.l.bf16 %v1228_v43  ;;  %v3035_v39 = vunpack.c.l.bf16 %v1278_v60  ;;  %v1339_v63 = vpack.c.bf16 %v1331_v27, %v1331_v27 }
 0x1e2   : > { %3581 = vst [vmem:[#allocation13_spill] sm:$0xff] %v3020_v33  ;;  %v1357_v59 = vpack.c.bf16 %v1349_v12, %v1349_v12  ;;  %v1150_v37 = vpack.c.bf16 %v1142_v22, %v1142_v22  ;;  %v983_v44 = vsel %vm972_vm11, %v3546_v9, %v961_v10  ;;  %v986_v3 = vrot.slane %v949_v0, 1 }
 0x1e3   : > { %3582 = vst [vmem:[#allocation14_spill] sm:$0xff] %v3027_v17  ;;  %v1011_v11 = vpack.c.bf16 %v949_v0, %v949_v0  ;;  %v1122_v14 = vadd.f32 %v1114_v8, %v2922_v62  ;;  %v3042_v2 = vunpack.c.l.bf16 %v1339_v63  ;;  %v1023_v43 = vpack.c.bf16 %v983_v44, %v983_v44 }
 0x1e4   : > { %3583 = vst [vmem:[#allocation15_spill] sm:$0xff] %v3035_v39  ;;  %v3046_v60 = vunpack.c.l.bf16 %v1357_v59  ;;  %v1007_v12 = vsel %vm997_vm12, %v986_v3, %v987_v48  ;;  %v1008_v10 = vsel %vm997_vm12, %v3550_v54, %v986_v3  ;;  %v1024_v0 = vpack.c.bf16 %v982_v15, %v982_v15  ;;  %v864_v54 = vpop.f32.mrf.mxu3 }
 0x1e5   : > { %v1034_v62 = vpack.c.bf16 %v1008_v10, %v1008_v10  ;;  %v1035_v22 = vpack.c.bf16 %v1007_v12, %v1007_v12  ;;  %v1054_v27 = vunpack.c.l.bf16 %v1011_v11  ;;  %v1186_v8 = vunpack.c.l.bf16 %v1023_v43 }
 0x1e6   : > { %3584 = vst [vmem:[#allocation16_spill] sm:$0xff] %v3046_v60  ;;  %v3056_v63 = vunpack.c.l.bf16 %v1150_v37  ;;  %v1187_v44 = vunpack.c.l.bf16 %v1024_v0  ;;  %v3549_v59 = vrot.slane %v3023_v1, 7  ;;  %v3551_v19 = vrot.slane %v3023_v1, 1 }
 0x1e7   : > { %v1063_v40 = vmul.f32 %v2841_v24, %v1054_v27  ;;  %v1195_v48 = vmul.f32 %v2853_v38, %v1186_v8  ;;  %v1315_v9 = vunpack.c.l.bf16 %v1034_v62  ;;  %v1316_v33 = vunpack.c.l.bf16 %v1035_v22 }
 0x1e8   : > { %3585 = vst [vmem:[#allocation17_spill] sm:$0xff] %v3056_v63  ;;  %v1130_v46 = vpack.c.bf16 %v1122_v14, %v1122_v14  ;;  %v1196_v15 = vmul.f32 %v2853_v38, %v1187_v44  ;;  %v1214_v3 = vmul.f32 %v2879_v53, %v1187_v44  ;;  %v3586_v37 = vrot.slane %v2848_v32, 7 }
 0x1e9   : > { %v1071_v43 = vpack.c.bf16 %v1063_v40, %v1063_v40  ;;  %v1203_v12 = vpack.c.bf16 %v1195_v48, %v1195_v48  ;;  %v1324_v10 = vmul.f32 %v2887_v56, %v1315_v9  ;;  %v1325_v0 = vmul.f32 %v2887_v56, %v1316_v33 }
 0x1ea   : > { %v980_v11 = vsel %vm972_vm11, %v3586_v37, %v3549_v59  ;;  %v1204_v62 = vpack.c.bf16 %v1196_v15, %v1196_v15  ;;  %v1222_v22 = vpack.c.bf16 %v1214_v3, %v1214_v3  ;;  %v3587_v14 = vrot.slane %v2848_v32, 1  ;;  %v859_v3 = vpop.f32.mrf.mxu2 }
 0x1eb   : > { %v1014_v8 = vpack.c.bf16 %v3023_v1, %v3023_v1  ;;  %v1101_v44 = vunpack.c.l.bf16 %v1071_v43  ;;  %v1231_v37 = vunpack.c.l.bf16 %v1203_v12  ;;  %v1332_v40 = vpack.c.bf16 %v1324_v10, %v1324_v10 }
 0x1ec   : > { %v1005_v27 = vsel %vm997_vm12, %v3587_v14, %v3551_v19  ;;  %v1333_v48 = vpack.c.bf16 %v1325_v0, %v1325_v0  ;;  %v3080_v59 = vunpack.c.l.bf16 %v1130_v46  ;;  %v1232_v9 = vunpack.c.l.bf16 %v1204_v62  ;;  %v849_v46 = vpop.f32.mrf.mxu1 }
 0x1ed   : > { %v1026_v33 = vpack.c.bf16 %v980_v11, %v980_v11  ;;  %v1037_v15 = vpack.c.bf16 %v1005_v27, %v1005_v27  ;;  %v1117_v63 = vadd.f32 %v2916_v34, %v1101_v44  ;;  %v3083_v32 = vunpack.c.l.bf16 %v1222_v22 }
 0x1ee   : > { %3588 = vst [vmem:[#allocation18_spill] sm:$0xff] %v3080_v59  ;;  %v3086_v14 = vadd.f32 %v2935_v36, %v1231_v37  ;;  %v3088_v19 = vunpack.c.l.bf16 %v1332_v40  ;;  %v1361_v43 = vunpack.c.l.bf16 %v1333_v48  ;;  %v1057_v12 = vunpack.c.l.bf16 %v1014_v8 }
 0x1ef   : > { %v1189_v10 = vunpack.c.l.bf16 %v1026_v33  ;;  %v1318_v0 = vunpack.c.l.bf16 %v1037_v15  ;;  %v1125_v59 = vpack.c.bf16 %v1117_v63, %v1117_v63  ;;  %v860_v62 = vadd.f32 %v2826_v42, %v859_v3 }
 0x1f0   : > { %3589 = vst [vmem:[#allocation19_spill] sm:$0xff] %v3088_v19  ;;  %v865_v34 = vadd.f32 %v2826_v42, %v864_v54  ;;  %v1066_v22 = vmul.f32 %v2841_v24, %v1057_v12  ;;  %v1086_v36 = vmul.f32 %v2843_v26, %v1057_v12  ;;  %v1136_v27 = vmul.f32 %v2845_v28, %v1057_v12 }
 0x1f1   : > { %v1198_v44 = vmul.f32 %v2853_v38, %v1189_v10  ;;  %v1216_v8 = vmul.f32 %v2879_v53, %v1189_v10  ;;  %v1266_v37 = vmul.f32 %v2893_v18, %v1189_v10  ;;  %v1327_v63 = vmul.f32 %v2887_v56, %v1318_v0 }
 0x1f2   : > { %v3102_v40 = vadd.f32 %v2826_v42, %v849_v46  ;;  %v1074_v48 = vpack.c.bf16 %v1066_v22, %v1066_v22  ;;  %v1094_v33 = vpack.c.bf16 %v1086_v36, %v1086_v36  ;;  %v1144_v54 = vpack.c.bf16 %v1136_v27, %v1136_v27 }
 0x1f3   : > { %v1206_v15 = vpack.c.bf16 %v1198_v44, %v1198_v44  ;;  %v3104_v3 = vunpack.c.l.bf16 %v1125_v59  ;;  %v1224_v11 = vpack.c.bf16 %v1216_v8, %v1216_v8  ;;  %v1274_v4 = vpack.c.bf16 %v1266_v37, %v1266_v37 }
 0x1f4   : > { %v1345_v12 = vmul.f32 %v2889_v57, %v1318_v0  ;;  %v1104_v60 = vunpack.c.l.bf16 %v1074_v48  ;;  %v1110_v23 = vunpack.c.l.bf16 %v1094_v33  ;;  %v3107_v39 = vunpack.c.l.bf16 %v1144_v54 }
 0x1f5   : > { %v1335_v10 = vpack.c.bf16 %v1327_v63, %v1327_v63  ;;  %v3109_v17 = vunpack.c.l.bf16 %v1206_v15  ;;  %v1240_v41 = vunpack.c.l.bf16 %v1224_v11  ;;  %v3111_v42 = vunpack.c.l.bf16 %v1274_v4 }
 0x1f6   : > { %v1353_v46 = vpack.c.bf16 %v1345_v12, %v1345_v12  ;;  %v1118_v22 = vadd.f32 %v1110_v23, %v2906_v25  ;;  %v1120_v59 = vadd.f32 %v2924_v49, %v1104_v60  ;;  %v969_v36 = vrot.slane %v860_v62, 7 }
 0x1f7   : > { %3590 = vst [vmem:[#allocation20_spill] sm:$0xff] %v3111_v42  ;;  %v994_v27 = vrot.slane %v860_v62, 1  ;;  %v3115_v44 = vadd.f32 %v1240_v41, %v1232_v9  ;;  %v1019_v8 = vpack.c.bf16 %v860_v62, %v860_v62  ;;  %v3118_v37 = vmul.f32 %v2911_v20, %v865_v34 }
 0x1f8   : > { %v1369_v0 = vunpack.c.l.bf16 %v1353_v46  ;;  %v1126_v63 = vpack.c.bf16 %v1118_v22, %v1118_v22  ;;  %v1128_v48 = vpack.c.bf16 %v1120_v59, %v1120_v59  ;;  %v3591_v11 = vrot.slane %v2972_v55, 7 }
 0x1f9   : > { %v3592_v25 = vrot.slane %v2961_v30, 7  ;;  %v3130_v23 = vunpack.c.l.bf16 %v1335_v10  ;;  %v3594_v20 = vrot.slane %v2972_v55, 1  ;;  %v3595_v9 = vrot.slane %v2961_v30, 1 }
 0x1fa   : > { %v974_v4 = vsel %vm972_vm11, %v969_v36, %v3591_v11  ;;  %v3140_v34 = vunpack.c.l.bf16 %v1126_v63  ;;  %v3142_v33 = vadd.f32 %v1369_v0, %v1361_v43  ;;  %v3144_v12 = vunpack.c.l.bf16 %v1128_v48 }
 0x1fb   : > { %v975_v49 = vsel %vm972_vm11, %v3592_v25, %v969_v36  ;;  %3593 = vst [vmem:[#allocation21_spill] sm:$0xff] %v3130_v23  ;;  %v999_v60 = vsel %vm997_vm12, %v994_v27, %v3594_v20  ;;  %v1000_v62 = vsel %vm997_vm12, %v3595_v9, %v994_v27  ;;  %v1032_v15 = vpack.c.bf16 %v974_v4, %v974_v4 }
 0x1fc   : > { %v1031_v54 = vpack.c.bf16 %v975_v49, %v975_v49  ;;  %3596 = vst [vmem:[#allocation22_spill] sm:$0xff] %v3144_v12  ;;  %v1042_v10 = vpack.c.bf16 %v1000_v62, %v1000_v62  ;;  %v1043_v46 = vpack.c.bf16 %v999_v60, %v999_v60  ;;  %v1082_v22 = vunpack.c.l.bf16 %v1019_v8 }
 0x1fd   : > { %v1263_v36 = vunpack.c.l.bf16 %v1032_v15  ;;  %v971_v11 = vrot.slane %v3118_v37, 7  ;;  %v996_v30 = vrot.slane %v3118_v37, 1  ;;  %v1021_v8 = vpack.c.bf16 %v3118_v37, %v3118_v37 }
 0x1fe   : > { %v1212_v59 = vunpack.c.l.bf16 %v1031_v54  ;;  %v1091_v25 = vmul.f32 %v2843_v26, %v1082_v22  ;;  %v1141_v27 = vmul.f32 %v2845_v28, %v1082_v22  ;;  %v1341_v63 = vunpack.c.l.bf16 %v1042_v10 }
 0x1ff   : > { %v1342_v43 = vunpack.c.l.bf16 %v1043_v46  ;;  %v1272_v4 = vmul.f32 %v2893_v18, %v1263_v36  ;;  %v3597_v10 = vrot.slane %v2972_v55, 7 }
 0x200   : > { %v1221_v0 = vmul.f32 %v2879_v53, %v1212_v59  ;;  %v1271_v48 = vmul.f32 %v2893_v18, %v1212_v59  ;;  %v1099_v49 = vpack.c.bf16 %v1091_v25, %v1091_v25  ;;  %v1149_v20 = vpack.c.bf16 %v1141_v27, %v1141_v27 }
 0x201   : > { %v1350_v60 = vmul.f32 %v2889_v57, %v1341_v63  ;;  %v1351_v9 = vmul.f32 %v2889_v57, %v1342_v43  ;;  %v1403_v15 = vmul.f32 %v2904_v13, %v1341_v63  ;;  %v973_v46 = vsel %vm972_vm11, %v3597_v10, %v971_v11 }
 0x202   : > { %v1229_v62 = vpack.c.bf16 %v1221_v0, %v1221_v0  ;;  %v1279_v54 = vpack.c.bf16 %v1271_v48, %v1271_v48  ;;  %v1115_v22 = vunpack.c.l.bf16 %v1099_v49  ;;  %v1280_v59 = vpack.c.bf16 %v1272_v4, %v1272_v4 }
 0x203   : > { %v1358_v36 = vpack.c.bf16 %v1350_v60, %v1350_v60  ;;  %v1359_v41 = vpack.c.bf16 %v1351_v9, %v1351_v9  ;;  %v3162_v37 = vunpack.c.l.bf16 %v1149_v20  ;;  %v1404_v23 = vmul.f32 %v2904_v13, %v1342_v43 }
 0x204   : > { %v1245_v25 = vunpack.c.l.bf16 %v1229_v62  ;;  %v3164_v27 = vunpack.c.l.bf16 %v1279_v54  ;;  %v1123_v0 = vadd.f32 %v1115_v22, %v2967_v52  ;;  %v1411_v12 = vpack.c.bf16 %v1403_v15, %v1403_v15 }
 0x205   : > { %v1374_v48 = vunpack.c.l.bf16 %v1358_v36  ;;  %v1375_v63 = vunpack.c.l.bf16 %v1359_v41  ;;  %v1412_v42 = vpack.c.bf16 %v1404_v23, %v1404_v23  ;;  %v3598_v49 = vrot.slane %v2940_v29, 7 }
 0x206   : > { %v1253_v19 = vadd.f32 %v1245_v25, %v2983_v6  ;;  %v3599_v20 = vrot.slane %v2972_v55, 1  ;;  %v1131_v9 = vpack.c.bf16 %v1123_v0, %v1123_v0  ;;  %v3177_v43 = vunpack.c.l.bf16 %v1280_v59 }
 0x207   : > { %v984_v4 = vsel %vm972_vm11, %v971_v11, %v3598_v49  ;;  %v3180_v52 = vadd.f32 %v1374_v48, %v2989_v35  ;;  %v3183_v41 = vadd.f32 %v1375_v63, %v3042_v2  ;;  %v3185_v23 = vunpack.c.l.bf16 %v1411_v12 }
 0x208   : > { %v998_v60 = vsel %vm997_vm12, %v3599_v20, %v996_v30  ;;  %v1261_v6 = vpack.c.bf16 %v1253_v19, %v1253_v19  ;;  %v3600_v62 = vrot.slane %v2940_v29, 1  ;;  %v1022_v11 = vpack.c.bf16 %v984_v4, %v984_v4 }
 0x209   : > { %v3191_v54 = vunpack.c.l.bf16 %v1412_v42  ;;  %v1033_v15 = vpack.c.bf16 %v973_v46, %v973_v46  ;;  %v1044_v10 = vpack.c.bf16 %v998_v60, %v998_v60  ;;  %v1159_v59 = vunpack.c.l.bf16 %v1131_v9 }
 0x20a   : > { %v1009_v55 = vsel %vm997_vm12, %v996_v30, %v3600_v62  ;;  %v1134_v35 = vunpack.c.l.bf16 %v1021_v8  ;;  %v1185_v36 = vunpack.c.l.bf16 %v1022_v11  ;;  %v965_v2 = vrot.slane %v3102_v40, 7 }
 0x20b   : > { %v1045_v22 = vpack.c.bf16 %v1009_v55, %v1009_v55  ;;  %v1264_v25 = vunpack.c.l.bf16 %v1033_v15  ;;  %v1396_v19 = vunpack.c.l.bf16 %v1044_v10  ;;  %v990_v0 = vrot.slane %v3102_v40, 1 }
 0x20c   : > { %v3195_v29 = vunpack.c.l.bf16 %v1261_v6  ;;  %v1143_v30 = vmul.f32 %v2845_v28, %v1134_v35  ;;  %v1194_v42 = vmul.f32 %v2853_v38, %v1185_v36  ;;  %v3601_v46 = vrot.slane %v3023_v1, 7 }
 0x20d   : > { %v1397_v12 = vunpack.c.l.bf16 %v1045_v22  ;;  %v1273_v8 = vmul.f32 %v2893_v18, %v1264_v25  ;;  %v3205_v63 = vmul.f32 %v2904_v13, %v1396_v19  ;;  %v3602_v4 = vrot.slane %v2862_v45, 7 }
 0x20e   : > { %v979_v48 = vsel %vm972_vm11, %v3601_v46, %v965_v2  ;;  %v1151_v60 = vpack.c.bf16 %v1143_v30, %v1143_v30  ;;  %v1202_v9 = vpack.c.bf16 %v1194_v42, %v1194_v42  ;;  %v3603_v6 = vrot.slane %v3023_v1, 1 }
 0x20f   : > { %v3208_v49 = vmul.f32 %v2904_v13, %v1397_v12  ;;  %v978_v20 = vsel %vm972_vm11, %v965_v2, %v3602_v4  ;;  %v1015_v55 = vpack.c.bf16 %v3102_v40, %v3102_v40  ;;  %v1281_v11 = vpack.c.bf16 %v1273_v8, %v1273_v8 }
 0x210   : > { %v1004_v62 = vsel %vm997_vm12, %v3603_v6, %v990_v0  ;;  %v1413_v15 = vpack.c.bf16 %v3205_v63, %v3205_v63  ;;  %v3604_v10 = vrot.slane %v2862_v45, 1  ;;  %v1027_v35 = vpack.c.bf16 %v979_v48, %v979_v48 }
 0x211   : > { %v1167_v36 = vunpack.c.l.bf16 %v1151_v60  ;;  %v1230_v2 = vunpack.c.l.bf16 %v1202_v9  ;;  %v1028_v25 = vpack.c.bf16 %v978_v20, %v978_v20  ;;  %v1038_v1 = vpack.c.bf16 %v1004_v62, %v1004_v62 }
 0x212   : > { %v1003_v22 = vsel %vm997_vm12, %v990_v0, %v3604_v10  ;;  %v3226_v19 = vunpack.c.l.bf16 %v1281_v11  ;;  %v1414_v12 = vpack.c.bf16 %v3208_v49, %v3208_v49  ;;  %v1058_v40 = vunpack.c.l.bf16 %v1015_v55 }
 0x213   : > { %v1190_v30 = vunpack.c.l.bf16 %v1027_v35  ;;  %v3230_v42 = vadd.f32 %v1167_v36, %v1159_v59  ;;  %v3233_v46 = vadd.f32 %v3083_v32, %v1230_v2  ;;  %v1039_v45 = vpack.c.bf16 %v1003_v22, %v1003_v22 }
 0x214   : > { %v1191_v8 = vunpack.c.l.bf16 %v1028_v25  ;;  %v1067_v0 = vmul.f32 %v2841_v24, %v1058_v40  ;;  %v1087_v48 = vmul.f32 %v2843_v26, %v1058_v40  ;;  %v1137_v4 = vmul.f32 %v2845_v28, %v1058_v40 }
 0x215   : > { %v1199_v20 = vmul.f32 %v2853_v38, %v1190_v30  ;;  %v1217_v9 = vmul.f32 %v2879_v53, %v1190_v30  ;;  %v1319_v6 = vunpack.c.l.bf16 %v1038_v1  ;;  %v1254_v32 = vpack.c.bf16 %v3233_v46, %v3233_v46 }
 0x216   : > { %v1200_v60 = vmul.f32 %v2853_v38, %v1191_v8  ;;  %v1218_v59 = vmul.f32 %v2879_v53, %v1191_v8  ;;  %v1075_v62 = vpack.c.bf16 %v1067_v0, %v1067_v0  ;;  %v1095_v55 = vpack.c.bf16 %v1087_v48, %v1087_v48 }
 0x217   : > { %v1207_v11 = vpack.c.bf16 %v1199_v20, %v1199_v20  ;;  %v1225_v10 = vpack.c.bf16 %v1217_v9, %v1217_v9  ;;  %v1267_v28 = vmul.f32 %v2893_v18, %v1190_v30  ;;  %v1145_v36 = vpack.c.bf16 %v1137_v4, %v1137_v4 }
 0x218   : > { %v1208_v24 = vpack.c.bf16 %v1200_v60, %v1200_v60  ;;  %v1226_v26 = vpack.c.bf16 %v1218_v59, %v1218_v59  ;;  %v1105_v22 = vunpack.c.l.bf16 %v1075_v62  ;;  %v1111_v35 = vunpack.c.l.bf16 %v1095_v55 }
 0x219   : > { %v1235_v38 = vunpack.c.l.bf16 %v1207_v11  ;;  %v1241_v25 = vunpack.c.l.bf16 %v1225_v10  ;;  %v1268_v53 = vmul.f32 %v2893_v18, %v1191_v8  ;;  %v1275_v20 = vpack.c.bf16 %v1267_v28, %v1267_v28 }
 0x21a   : > { %v1236_v2 = vunpack.c.l.bf16 %v1208_v24  ;;  %v1242_v40 = vunpack.c.l.bf16 %v1226_v26  ;;  %v1119_v1 = vadd.f32 %v1111_v35, %v2914_v31  ;;  %v1121_v0 = vadd.f32 %v2979_v58, %v1105_v22 }
 0x21b   : > { %v3249_v48 = vadd.f32 %v2985_v5, %v1235_v38  ;;  %v3252_v60 = vadd.f32 %v1241_v25, %v2933_v50  ;;  %v1276_v9 = vpack.c.bf16 %v1268_v53, %v1268_v53  ;;  %v1161_v8 = vunpack.c.l.bf16 %v1145_v36 }
 0x21c   : > { %v3255_v30 = vadd.f32 %v1242_v40, %v3109_v17  ;;  %v3258_v4 = vadd.f32 %v3033_v16, %v1236_v2  ;;  %v1127_v59 = vpack.c.bf16 %v1119_v1, %v1119_v1  ;;  %v1129_v18 = vpack.c.bf16 %v1121_v0, %v1121_v0 }
 0x21d   : > { %v1259_v31 = vpack.c.bf16 %v3249_v48, %v3249_v48  ;;  %v1257_v58 = vpack.c.bf16 %v3252_v60, %v3252_v60  ;;  %v1291_v17 = vunpack.c.l.bf16 %v1275_v20  ;;  %v1292_v16 = vunpack.c.l.bf16 %v1276_v9 }
 0x21e   : > { %v1258_v50 = vpack.c.bf16 %v3255_v30, %v3255_v30  ;;  %v1260_v5 = vpack.c.bf16 %v3258_v4, %v3258_v4  ;;  %v3268_v62 = vunpack.c.l.bf16 %v1127_v59  ;;  %v1320_v55 = vunpack.c.l.bf16 %v1039_v45  ;;  %v3623_v4 = vld [vmem:[#allocation18_spill] sm:$0xff] }
 0x21f   : > { %v1328_v11 = vmul.f32 %v2887_v56, %v1319_v6  ;;  %v1346_v24 = vmul.f32 %v2889_v57, %v1319_v6  ;;  %v1399_v10 = vmul.f32 %v2904_v13, %v1319_v6  ;;  %v876_v26 = vadd.s32 16, %v2834_v21 }
 0x220   : > { %v1170_v28 = vadd.f32 %v2926_v51, %v3140_v34  ;;  %v1329_v22 = vmul.f32 %v2887_v56, %v1320_v55  ;;  %v3278_v36 = vmul.f32 %v2889_v57, %v1320_v55  ;;  %v1400_v38 = vmul.f32 %v2904_v13, %v1320_v55 }
 0x221   : > { %v1336_v35 = vpack.c.bf16 %v1328_v11, %v1328_v11  ;;  %v3281_v45 = vunpack.c.l.bf16 %v1129_v18  ;;  %v1354_v2 = vpack.c.bf16 %v1346_v24, %v1346_v24  ;;  %v1407_v25 = vpack.c.bf16 %v1399_v10, %v1399_v10 }
 0x222   : > { %v3605_v6 = vpack.c.bf16 %v3115_v44, %v3115_v44  ;;  %v1337_v53 = vpack.c.bf16 %v1329_v22, %v1329_v22  ;;  %v1355_v51 = vpack.c.bf16 %v3278_v36, %v3278_v36  ;;  %v1178_v56 = vpack.c.bf16 %v1170_v28, %v1170_v28 }
 0x223   : > { %v3288_v34 = vunpack.c.l.bf16 %v1336_v35  ;;  %v1370_v1 = vunpack.c.l.bf16 %v1354_v2  ;;  %v1408_v57 = vpack.c.bf16 %v1400_v38, %v1400_v38  ;;  %v1465_v20 = vand.u32 15, %v876_v26 }
 0x224   : > { %v1284_v40 = vunpack.c.l.bf16 %v3605_v6  ;;  %v3290_v13 = vunpack.c.l.bf16 %v1337_v53  ;;  %v3606_v9 = vpack.c.bf16 %v2975_v7, %v2975_v7  ;;  %v2322_v55 = vmov 1.0|1.0  }
 0x225   : > { %v1378_v44 = vadd.f32 %v1370_v1, %v2937_v47  ;;  %vm1545_vm13 = vcmp.ne.s32.totalorder %v1465_v20, 0  ;;  %v3296_v11 = vunpack.c.l.bf16 %v2322_v55  ;;  %v2323_v24 = vmov 0.0   ;;  %v3608_v55 = vld [vmem:[#allocation20_spill] sm:$0xff] }
 0x226   : > { %v1300_v0 = vadd.f32 %v1292_v16, %v1284_v40  ;;  %v1425_v59 = vunpack.c.l.bf16 %v3606_v9  ;;  %v2098_v10 = vsel %vm1545_vm13, 1.0, %v2323_v24  ;;  %v1641_v28 = vunpack.c.l.bf16 %v1178_v56 }
 0x227   : > { %v875_v16 = vadd.s32 8, %v2834_v21  ;;  %v1169_v26 = vadd.f32 %v1161_v8, %v3104_v3  ;;  %v1386_v22 = vpack.c.bf16 %v1378_v44, %v1378_v44  ;;  %v3607_v7 = vpack.c.bf16 %v3086_v14, %v3086_v14 }
 0x228   : > { %v1308_v18 = vpack.c.bf16 %v1300_v0, %v1300_v0  ;;  %v1385_v47 = vpack.c.bf16 %v3142_v33, %v3142_v33  ;;  %v1424_v6 = vunpack.c.l.bf16 %v1408_v57  ;;  %v1168_v53 = vadd.f32 %v3107_v39, %v3025_v61  ;;  %v3609_v61 = vld [vmem:[#allocation19_spill] sm:$0xff]  ;;  %v3610_v39 = vld [vmem:[#allocation9_spill] sm:$0xff] }
 0x229   : > { %v1283_v38 = vunpack.c.l.bf16 %v3607_v7  ;;  %v1177_v2 = vpack.c.bf16 %v1169_v26, %v1169_v26  ;;  %v1458_v40 = vand.u32 15, %v875_v16  ;;  %v1417_v56 = vunpack.c.l.bf16 %v1386_v22 }
 0x22a   : > { %v1609_v35 = vunpack.c.l.bf16 %v1308_v18  ;;  %v1416_v20 = vunpack.c.l.bf16 %v1385_v47  ;;  %v1176_v8 = vpack.c.bf16 %v1168_v53, %v1168_v53  ;;  %v1282_v14 = vunpack.c.l.bf16 %v1254_v32 }
 0x22b   : > { %v1299_v0 = vadd.f32 %v1291_v17, %v1283_v38  ;;  %vm1576_vm14 = vcmp.ne.s32.totalorder %v1458_v40, 15  ;;  %v1640_v3 = vunpack.c.l.bf16 %v1177_v2  ;;  %v1433_v9 = vadd.f32 %v1425_v59, %v1417_v56 }
 0x22c   : > { %v1625_v1 = vmul.f32 %v2098_v10, %v1609_v35  ;;  %v1432_v44 = vadd.f32 %v1424_v6, %v1416_v20  ;;  %v2101_v57 = vsel %vm1576_vm14, 1.0, %v2323_v24  ;;  %v1298_v16 = vadd.f32 %v3608_v55, %v1282_v14 }
 0x22d   : > { %v1307_v33 = vpack.c.bf16 %v1299_v0, %v1299_v0  ;;  %v1376_v10 = vadd.f32 %v3610_v39, %v3609_v61  ;;  %v1423_v17 = vunpack.c.l.bf16 %v1407_v25  ;;  %v1441_v26 = vpack.c.bf16 %v1433_v9, %v1433_v9 }
 0x22e   : > { %v1633_v18 = vpack.c.bf16 %v1625_v1, %v1625_v1  ;;  %v1440_v35 = vpack.c.bf16 %v1432_v44, %v1432_v44  ;;  %v1306_v38 = vpack.c.bf16 %v1298_v16, %v1298_v16  ;;  %v1451_v46 = vand.u32 15, %v2834_v21 }
 0x22f   : > { %v1608_v7 = vunpack.c.l.bf16 %v1307_v33  ;;  %v1384_v47 = vpack.c.bf16 %v1376_v10, %v1376_v10  ;;  %v1639_v32 = vunpack.c.l.bf16 %v1176_v8  ;;  %v1673_v2 = vunpack.c.l.bf16 %v1441_v26  ;;  %v3611_v33 = vld [vmem:[#allocation22_spill] sm:$0xff] }
 0x230   : > { %v1649_v22 = vunpack.c.l.bf16 %v1633_v18  ;;  %v1672_v40 = vunpack.c.l.bf16 %v1440_v35  ;;  %vm1543_vm15 = vcmp.ne.s32.totalorder %v1451_v46, 0  ;;  %v1607_v56 = vunpack.c.l.bf16 %v1306_v38  ;;  %v3612_v8 = vld [vmem:[#allocation14_spill] sm:$0xff]  ;;  %v3613_v35 = vld [vmem:[#allocation15_spill] sm:$0xff] }
 0x231   : > { %v1624_v6 = vmul.f32 %v3296_v11, %v1608_v7  ;;  %v1415_v53 = vunpack.c.l.bf16 %v1384_v47  ;;  %v878_v1 = vadd.s32 32, %v2834_v21  ;;  %v1689_v0 = vmul.f32 %v1673_v2, %v3296_v11  ;;  %v3614_v47 = vld [vmem:[#allocation12_spill] sm:$0xff] }
 0x232   : > { %v1657_v59 = vadd.f32 %v1649_v22, %v1641_v28  ;;  %v1688_v14 = vmul.f32 %v2101_v57, %v1672_v40  ;;  %v2097_v18 = vsel %vm1543_vm15, 1.0, %v2323_v24  ;;  %v1172_v28 = vadd.f32 %v3612_v8, %v3611_v33 }
 0x233   : > { %v1632_v20 = vpack.c.bf16 %v1624_v6, %v1624_v6  ;;  %v1431_v9 = vadd.f32 %v1423_v17, %v1415_v53  ;;  %v1286_v44 = vunpack.c.l.bf16 %v1258_v50  ;;  %v1697_v55 = vpack.c.bf16 %v1689_v0, %v1689_v0 }
 0x234   : > { %v1665_v25 = vpack.c.bf16 %v1657_v59, %v1657_v59  ;;  %v1696_v39 = vpack.c.bf16 %v1688_v14, %v1688_v14  ;;  %v1623_v26 = vmul.f32 %v2097_v18, %v1607_v56  ;;  %v1180_v22 = vpack.c.bf16 %v1172_v28, %v1172_v28 }
 0x235   : > { %v1648_v61 = vunpack.c.l.bf16 %v1632_v20  ;;  %v1439_v10 = vpack.c.bf16 %v1431_v9, %v1431_v9  ;;  %v1302_v7 = vadd.f32 %v3613_v35, %v1286_v44  ;;  %v1713_v57 = vunpack.c.l.bf16 %v1697_v55 }
 0x236   : > { %v1705_v16 = vunpack.c.l.bf16 %v1665_v25  ;;  %v1712_v38 = vunpack.c.l.bf16 %v1696_v39  ;;  %v1380_v46 = vadd.f32 %v3614_v47, %v3288_v34  ;;  %v1631_v59 = vpack.c.bf16 %v1623_v26, %v1623_v26  ;;  %v3615_v47 = vld [vmem:[#allocation16_spill] sm:$0xff] }
 0x237   : > { %v1656_v17 = vadd.f32 %v1648_v61, %v1640_v3  ;;  %v1671_v2 = vunpack.c.l.bf16 %v1439_v10  ;;  %v1310_v6 = vpack.c.bf16 %v1302_v7, %v1302_v7  ;;  %v1479_v30 = vand.u32 15, %v878_v1  ;;  %v3332_v3 = vld [vmem:[%s3530_s3 + $0x1] ss:$0 sm:$0xff] }
 0x238   : > { %v1721_v50 = vadd.f32 %v1713_v57, %v1705_v16  ;;  %v1388_v53 = vpack.c.bf16 %v1380_v46, %v1380_v46  ;;  %v1643_v25 = vunpack.c.l.bf16 %v1180_v22  ;;  %v1647_v0 = vunpack.c.l.bf16 %v1631_v59 }
 0x239   : > { %v1664_v40 = vpack.c.bf16 %v1656_v17, %v1656_v17  ;;  %v1687_v56 = vmul.f32 %v1671_v2, %v3296_v11  ;;  %vm1547_vm1 = vcmp.ne.s32.totalorder %v1479_v30, 0  ;;  %v1611_v20 = vunpack.c.l.bf16 %v1310_v6 }
 0x23a   : > { %v1729_v14 = vpack.c.bf16 %v1721_v50, %v1721_v50  ;;  %v1419_v9 = vunpack.c.l.bf16 %v1388_v53  ;;  %v2099_v18 = vsel %vm1547_vm1, 1.0, %v2323_v24  ;;  %v1655_v1 = vadd.f32 %v1647_v0, %v1639_v32 }
 0x23b   : > { %v1704_v34 = vunpack.c.l.bf16 %v1664_v40  ;;  %v1695_v33 = vpack.c.bf16 %v1687_v56, %v1687_v56  ;;  %v1627_v8 = vmul.f32 %v2099_v18, %v1611_v20  ;;  %v879_v28 = vadd.s32 40, %v2834_v21  ;;  %v3618_v20 = vld [vmem:[#allocation10_spill] sm:$0xff] }
 0x23c   : > { %v1737_v44 = vunpack.c.l.bf16 %v1729_v14  ;;  %v1435_v16 = vadd.f32 %v3185_v23, %v1419_v9  ;;  %v1173_v61 = vadd.f32 %v3162_v37, %v3281_v45  ;;  %v1663_v39 = vpack.c.bf16 %v1655_v1, %v1655_v1 }
 0x23d   : > { %v1720_v55 = vadd.f32 %v1712_v38, %v1704_v34  ;;  %v1711_v10 = vunpack.c.l.bf16 %v1695_v33  ;;  %v1635_v26 = vpack.c.bf16 %v1627_v8, %v1627_v8  ;;  %v1287_v22 = vunpack.c.l.bf16 %v1259_v31  ;;  %v3619_v33 = vld [vmem:[#allocation21_spill] sm:$0xff] }
 0x23e   : > { %v3343_v32 = vadd.f32 %v3332_v3, %v1737_v44  ;;  %v1443_v7 = vpack.c.bf16 %v1435_v16, %v1435_v16  ;;  %v1181_v57 = vpack.c.bf16 %v1173_v61, %v1173_v61  ;;  %v1703_v17 = vunpack.c.l.bf16 %v1663_v39  ;;  %v3620_v16 = vld [vmem:[#allocation11_spill] sm:$0xff] }
 0x23f   : > { %v1728_v35 = vpack.c.bf16 %v1720_v55, %v1720_v55  ;;  %v1651_v38 = vunpack.c.l.bf16 %v1635_v26  ;;  %v1303_v23 = vadd.f32 %v3164_v27, %v1287_v22  ;;  %v1381_v37 = vadd.f32 %v3615_v47, %v3290_v13 }
 0x240   : > { %v1371_v45 = vunpack.c.l.bf16 %v1355_v51  ;;  %1764 = vrot.lane.b32.xlu2 %v3343_v32, %s2324_s29  ;;  %v1675_v31 = vunpack.c.l.bf16 %v1443_v7  ;;  %v1486_v46 = vand.u32 15, %v879_v28  ;;  %v1719_v59 = vadd.f32 %v1711_v10, %v1703_v17 }
 0x241   : > { %v1736_v48 = vunpack.c.l.bf16 %v1728_v35  ;;  %v1659_v2 = vadd.f32 %v1651_v38, %v1643_v25  ;;  %v1311_v6 = vpack.c.bf16 %v1303_v23, %v1303_v23  ;;  %v1389_v30 = vpack.c.bf16 %v1381_v37, %v1381_v37 }
 0x242   : > { %v1691_v13 = vmul.f32 %v1675_v31, %v3296_v11  ;;  %vm3357_vm3 = vcmp.ne.s32.totalorder %v1486_v46, 15  ;;  %v1644_v36 = vunpack.c.l.bf16 %v1181_v57  ;;  %v1727_v51 = vpack.c.bf16 %v1719_v59, %v1719_v59  ;;  %v3621_v57 = vld [vmem:[#allocation13_spill] sm:$0xff] }
 0x243   : > { %v3354_v27 = vadd.f32 %v3332_v3, %v1736_v48  ;;  %v1667_v40 = vpack.c.bf16 %v1659_v2, %v1659_v2  ;;  %v1420_v53 = vunpack.c.l.bf16 %v1389_v30  ;;  %v877_v0 = vadd.s32 24, %v2834_v21 }
 0x244   : > { %v1699_v25 = vpack.c.bf16 %v1691_v13, %v1691_v13  ;;  %v1612_v56 = vunpack.c.l.bf16 %v1311_v6  ;;  %v1171_v14 = vadd.f32 %v3618_v20, %v3268_v62  ;;  %v1285_v34 = vunpack.c.l.bf16 %v1257_v58 }
 0x245   : > { %1762 = vrot.lane.b32.xlu1 %v3354_v27, %s2324_s29  ;;  %v1735_v9 = vunpack.c.l.bf16 %v1727_v51  ;;  %v1707_v18 = vunpack.c.l.bf16 %v1667_v40  ;;  %v1436_v1 = vadd.f32 %v3191_v54, %v1420_v53  ;;  %v1379_v8 = vadd.f32 %v1371_v45, %v3619_v33 }
 0x246   : > { %v1715_v28 = vunpack.c.l.bf16 %v1699_v25  ;;  %v1628_v44 = vmul.f32 %v3296_v11, %v1612_v56  ;;  %v1179_v55 = vpack.c.bf16 %v1171_v14, %v1171_v14  ;;  %v1301_v61 = vadd.f32 %v3620_v16, %v1285_v34 }
 0x247   : > { %v3374_v39 = vadd.f32 %v3332_v3, %v1735_v9  ;;  %v1444_v62 = vpack.c.bf16 %v1436_v1, %v1436_v1  ;;  %v2103_v60 = vsel %vm3357_vm3, 1.0, %v2323_v24  ;;  %v1387_v58 = vpack.c.bf16 %v1379_v8, %v1379_v8 }
 0x248   : > { %v1723_v10 = vadd.f32 %v1715_v28, %v1707_v18  ;;  %v1636_v26 = vpack.c.bf16 %v1628_v44, %v1628_v44  ;;  %v1309_v54 = vpack.c.bf16 %v1301_v61, %v1301_v61  ;;  %v1472_v22 = vand.u32 15, %v877_v0 }
 0x249   : > { %1760 = vrot.lane.b32.xlu0 %v3374_v39, %s2324_s29  ;;  %v1676_v35 = vunpack.c.l.bf16 %v1444_v62  ;;  %v1418_v7 = vunpack.c.l.bf16 %v1387_v58  ;;  %v3622_v17 = vpack.c.bf16 %v3621_v57, %v3621_v57  ;;  %v1642_v23 = vunpack.c.l.bf16 %v1179_v55 }
 0x24a   : > { %v1731_v47 = vpack.c.bf16 %v1723_v10, %v1723_v10  ;;  %v1652_v37 = vunpack.c.l.bf16 %v1636_v26  ;;  %vm1578_vm4 = vcmp.ne.s32.totalorder %v1472_v22, 15  ;;  %v1610_v45 = vunpack.c.l.bf16 %v1309_v54 }
 0x24b   : > { %v1426_v38 = vunpack.c.l.bf16 %v3622_v17  ;;  %v1692_v48 = vmul.f32 %v2103_v60, %v1676_v35  ;;  %v2102_v46 = vsel %vm1578_vm4, 1.0, %v2323_v24  ;;  %v881_v59 = vadd.s32 56, %v2834_v21 }
 0x24c   : > { %v1739_v2 = vunpack.c.l.bf16 %v1731_v47  ;;  %v1660_v6 = vadd.f32 %v1652_v37, %v1644_v36  ;;  %v1626_v30 = vmul.f32 %v3296_v11, %v1610_v45  ;;  %v1305_v13 = vadd.f32 %v3226_v19, %v3195_v29 }
 0x24d   : > { %v1434_v31 = vadd.f32 %v1426_v38, %v1418_v7  ;;  %v1700_v50 = vpack.c.bf16 %v1692_v48, %v1692_v48  ;;  %v1183_v40 = vpack.c.bf16 %v3230_v42, %v3230_v42  ;;  %v1391_v53 = vpack.c.bf16 %v3183_v41, %v3183_v41 }
 0x24e   : > { %v3394_v0 = vadd.f32 %v3332_v3, %v1739_v2  ;;  %v1668_v25 = vpack.c.bf16 %v1660_v6, %v1660_v6  ;;  %v1634_v56 = vpack.c.bf16 %v1626_v30, %v1626_v30  ;;  %v1313_v20 = vpack.c.bf16 %v1305_v13, %v1305_v13 }
 0x24f   : > { %v1442_v51 = vpack.c.bf16 %v1434_v31, %v1434_v31  ;;  %v1422_v14 = vunpack.c.l.bf16 %v1391_v53  ;;  %v1430_v29 = vunpack.c.l.bf16 %v1414_v12  ;;  %v1500_v19 = vand.u32 15, %v881_v59 }
 0x250   : > { %1768 = vrot.lane.b32.xlu2 %v3394_v0, %s2324_s29  ;;  %v1708_v42 = vunpack.c.l.bf16 %v1668_v25  ;;  %v1716_v34 = vunpack.c.l.bf16 %v1700_v50  ;;  %v1650_v9 = vunpack.c.l.bf16 %v1634_v56  ;;  %v1614_v41 = vunpack.c.l.bf16 %v1313_v20 }
 0x251   : > { %v1674_v36 = vunpack.c.l.bf16 %v1442_v51  ;;  %v1438_v1 = vadd.f32 %v1430_v29, %v1422_v14  ;;  %vm1582_vm5 = vcmp.ne.s32.totalorder %v1500_v19, 15  ;;  %v1646_v33 = vunpack.c.l.bf16 %v1183_v40 }
 0x252   : > { %v1724_v8 = vadd.f32 %v1716_v34, %v1708_v42  ;;  %v1658_v28 = vadd.f32 %v1650_v9, %v1642_v23  ;;  %v1630_v44 = vmul.f32 %v3296_v11, %v1614_v41  ;;  %v880_v55 = vadd.s32 48, %v2834_v21 }
 0x253   : > { %v1690_v18 = vmul.f32 %v2102_v46, %v1674_v36  ;;  %v1446_v12 = vpack.c.bf16 %v1438_v1, %v1438_v1  ;;  %v2104_v16 = vsel %vm1582_vm5, 1.0, %v2323_v24  ;;  %v1288_v61 = vunpack.c.l.bf16 %v1260_v5  ;;  %v3624_v5 = vld [vmem:[#allocation17_spill] sm:$0xff] }
 0x254   : > { %v1732_v62 = vpack.c.bf16 %v1724_v8, %v1724_v8  ;;  %v1666_v60 = vpack.c.bf16 %v1658_v28, %v1658_v28  ;;  %v1638_v58 = vpack.c.bf16 %v1630_v44, %v1630_v44  ;;  %v1390_v10 = vpack.c.bf16 %v3180_v52, %v3180_v52 }
 0x255   : > { %v1698_v49 = vpack.c.bf16 %v1690_v18, %v1690_v18  ;;  %v1678_v54 = vunpack.c.l.bf16 %v1446_v12  ;;  %v1304_v22 = vadd.f32 %v3177_v43, %v1288_v61  ;;  %v1429_v21 = vunpack.c.l.bf16 %v1413_v15 }
 0x256   : > { %v1740_v35 = vunpack.c.l.bf16 %v1732_v62  ;;  %v1706_v7 = vunpack.c.l.bf16 %v1666_v60  ;;  %v1654_v57 = vunpack.c.l.bf16 %v1638_v58  ;;  %v1421_v17 = vunpack.c.l.bf16 %v1390_v10 }
 0x257   : > { %v1714_v26 = vunpack.c.l.bf16 %v1698_v49  ;;  %v1174_v38 = vadd.f32 %v3624_v5, %v3623_v4  ;;  %v1694_v23 = vmul.f32 %v2104_v16, %v1678_v54  ;;  %v1312_v47 = vpack.c.bf16 %v1304_v22, %v1304_v22 }
 0x258   : > { %v1493_v37 = vand.u32 15, %v880_v55  ;;  %v3416_v52 = vadd.f32 %v3332_v3, %v1740_v35  ;;  %v1662_v48 = vadd.f32 %v1654_v57, %v1646_v33  ;;  %v1437_v43 = vadd.f32 %v1429_v21, %v1421_v17 }
 0x259   : > { %v1722_v45 = vadd.f32 %v1714_v26, %v1706_v7  ;;  %v1702_v31 = vpack.c.bf16 %v1694_v23, %v1694_v23  ;;  %v1613_v63 = vunpack.c.l.bf16 %v1312_v47  ;;  %v1182_v6 = vpack.c.bf16 %v1174_v38, %v1174_v38 }
 0x25a   : > { %vm1549_vm6 = vcmp.ne.s32.totalorder %v1493_v37, 0  ;;  %1770 = vrot.lane.b32.xlu1 %v3416_v52, %s2324_s29  ;;  %v1670_v46 = vpack.c.bf16 %v1662_v48, %v1662_v48  ;;  %v1445_v59 = vpack.c.bf16 %v1437_v43, %v1437_v43 }
 0x25b   : > { %v1730_v15 = vpack.c.bf16 %v1722_v45, %v1722_v45  ;;  %v2100_v2 = vsel %vm1549_vm6, 1.0, %v2323_v24  ;;  %v1718_v51 = vunpack.c.l.bf16 %v1702_v31  ;;  %v1645_v36 = vunpack.c.l.bf16 %v1182_v6 }
 0x25c   : > { %v1629_v30 = vmul.f32 %v2100_v2, %v1613_v63  ;;  %v1710_v50 = vunpack.c.l.bf16 %v1670_v46  ;;  %v1677_v40 = vunpack.c.l.bf16 %v1445_v59 }
 0x25d   : > { %v1738_v13 = vunpack.c.l.bf16 %v1730_v15 }
 0x25e   : > { %v1637_v53 = vpack.c.bf16 %v1629_v30, %v1629_v30  ;;  %v1726_v56 = vadd.f32 %v1718_v51, %v1710_v50  ;;  %v1693_v20 = vmul.f32 %v1677_v40, %v3296_v11 }
 0x25f   : > { %v1747_v25 = vadd.f32 %v3332_v3, %v1738_v13 }
 0x260   : > { %v1653_v14 = vunpack.c.l.bf16 %v1637_v53  ;;  %v1734_v29 = vpack.c.bf16 %v1726_v56, %v1726_v56  ;;  %v1701_v24 = vpack.c.bf16 %v1693_v20, %v1693_v20 }
 0x261   : > { %1766 = vrot.lane.b32.xlu0 %v1747_v25, %s2324_s29 }
 0x262   : > { %v1661_v19 = vadd.f32 %v1653_v14, %v1645_v36  ;;  %v1742_v42 = vunpack.c.l.bf16 %v1734_v29  ;;  %v1717_v18 = vunpack.c.l.bf16 %v1701_v24 }
 0x264   : > { %v1669_v34 = vpack.c.bf16 %v1661_v19, %v1661_v19  ;;  %v1751_v9 = vadd.f32 %v3332_v3, %v1742_v42 }
 0x266   : > { %v1709_v41 = vunpack.c.l.bf16 %v1669_v34  ;;  %1774 = vrot.lane.b32.xlu2 %v1751_v9, %s2324_s29 }
 0x268   : > { %v1725_v1 = vadd.f32 %v1717_v18, %v1709_v41 }
 0x26a   : > { %v1733_v33 = vpack.c.bf16 %v1725_v1, %v1725_v1 }
 0x26c   : > { %v1741_v8 = vunpack.c.l.bf16 %v1733_v33 }
 0x26e   : > { %v1750_v11 = vadd.f32 %v3332_v3, %v1741_v8 }
 0x270   : > { %1772 = vrot.lane.b32.xlu0 %v1750_v11, %s2324_s29 }
 0x29a   : > { %v1765_v28 = vpop.permute.xlu2 %1764 }
 0x29b   : > { %v1786_v44 = vmul.f32 %v1765_v28, %v3343_v32 }
 0x29d   : > { %v1794_v55 = vpack.c.bf16 %v1786_v44, %v1786_v44 }
 0x29f   : > { %1803 = vst.msk [vmem:[%s3433_s24 + $0x8] sm:$0xf] %vm1800_vm7, %v1794_v55 }
 0x2aa   : > { %v1769_v3 = vpop.permute.xlu2 %1768 }
 0x2ab   : > { %v1788_v49 = vmul.f32 %v1769_v3, %v3394_v0 }
 0x2ad   : > { %v1796_v12 = vpack.c.bf16 %v1788_v49, %v1788_v49 }
 0x2af   : > { %1805 = vst.msk [vmem:[%s3433_s24 + $0x10] sm:$0xf] %vm1800_vm7, %v1796_v12 }
 0x2b7   : > { %v1763_v32 = vpop.permute.xlu1 %1762 }
 0x2b8   : > { %v1785_v16 = vmul.f32 %v1763_v32, %v3354_v27 }
 0x2ba   : > { %v1793_v61 = vpack.c.bf16 %v1785_v16, %v1785_v16 }
 0x2bb   : > { %v1761_v62 = vpop.permute.xlu0 %1760 }
 0x2bc   : > { %1802 = vst.msk [vmem:[%s3433_s24 + $0x4] sm:$0xf] %vm1800_vm7, %v1793_v61  ;;  %v1784_v60 = vmul.f32 %v1761_v62, %v3374_v39 }
 0x2be   : > { %v1792_v58 = vpack.c.bf16 %v1784_v60, %v1784_v60 }
 0x2c0   : > { %v1775_v10 = vpop.permute.xlu2 %1774  ;;  %1801 = vst.msk [vmem:[%s3433_s24] sm:$0xf] %vm1800_vm7, %v1792_v58 }
 0x2c1   : > { %v1791_v0 = vmul.f32 %v1775_v10, %v1751_v9 }
 0x2c3   : > { %v1799_v26 = vpack.c.bf16 %v1791_v0, %v1791_v0 }
 0x2c5   : > { %1808 = vst.msk [vmem:[%s3433_s24 + $0x1c] sm:$0xf] %vm1800_vm7, %v1799_v26 }
 0x2cc   : > { %v1771_v54 = vpop.permute.xlu1 %1770 }
 0x2cd   : > { %v1789_v27 = vmul.f32 %v1771_v54, %v3416_v52 }
 0x2cf   : > { %v1797_v22 = vpack.c.bf16 %v1789_v27, %v1789_v27 }
 0x2d1   : > { %1806 = vst.msk [vmem:[%s3433_s24 + $0x14] sm:$0xf] %vm1800_vm7, %v1797_v22 }
 0x2d3   : > { %v1767_v21 = vpop.permute.xlu0 %1766 }
 0x2d4   : > { %v1787_v35 = vmul.f32 %v1767_v21, %v1747_v25 }
 0x2d6   : > { %v1795_v7 = vpack.c.bf16 %v1787_v35, %v1787_v35 }
 0x2d8   : > { %1804 = vst.msk [vmem:[%s3433_s24 + $0xc] sm:$0xf] %vm1800_vm7, %v1795_v7 }
 0x2e2   : > { %v1773_v39 = vpop.permute.xlu0 %1772 }
 0x2e3   : > { %v1790_v57 = vmul.f32 %v1773_v39, %v1750_v11  ;;  %1812 = sbr.rel (%p2105_p6) target bundleno = 746 (0x2ea), region = 56 }
 0x2e5   : > { %v1798_v17 = vpack.c.bf16 %v1790_v57, %v1790_v57 }
 0x2e7   : > { %1807 = vst.msk [vmem:[%s3433_s24 + $0x18] sm:$0xf] %vm1800_vm7, %v1798_v17 }
 0x2e8   : > { %vm1813_vm8 = vcmask 57344   ;;  %v2325_v4 = vmov 0.0  }
 0x2e9   : > { %1814 = vst.msk [vmem:[%s3457_s20] sm:$0x1] %vm1813_vm8, %v2325_v4 }
 0x2ea PF: > { %v1816_v5 = vsel %vm526_vm0, %v1784_v60, 0.0  ;;  %v1817_v38 = vsel %vm526_vm0, %v1785_v16, 0.0  ;;  %v1819_v23 = vsel %vm526_vm0, %v1786_v44, 0.0  ;;  %v1821_v37 = vsel %vm526_vm0, %v1787_v35, 0.0  ;;  %p2106_p7 = scmp.ne.s32.totalorder %s2303_s12, 3 }
 0x2eb   : > { %v1818_v47 = vadd.f32 %v1817_v38, %v1816_v5  ;;  %v1823_v45 = vsel %vm526_vm0, %v1788_v49, 0.0  ;;  %v1825_v43 = vsel %vm526_vm0, %v1789_v27, 0.0  ;;  %v1827_v63 = vsel %vm526_vm0, %v1790_v57, 0.0 }
 0x2ec   : > { %v1829_v46 = vsel %vm526_vm0, %v1791_v0, 0.0  ;;  %vm1838_vm9 = vcmask 57344  }
 0x2ed   : > { %v1820_v52 = vadd.f32 %v1819_v23, %v1818_v47 }
 0x2ef   : > { %v1822_v48 = vadd.f32 %v1821_v37, %v1820_v52 }
 0x2f0   : > { %v1815_v40 = vld [vmem:[%s3457_s20] sm:$0x1] }
 0x2f1   : > { %v1824_v31 = vadd.f32 %v1823_v45, %v1822_v48 }
 0x2f3   : > { %v1826_v15 = vadd.f32 %v1825_v43, %v1824_v31 }
 0x2f5   : > { %v1828_v59 = vadd.f32 %v1827_v63, %v1826_v15 }
 0x2f7   : > { %v1830_v2 = vadd.f32 %v1829_v46, %v1828_v59 }
 0x2f9   : > { %v1831_v6 = vrot.slane %v1830_v2, 4 }
 0x2fb   : > { %v1832_v30 = vadd.f32 %v1831_v6, %v1830_v2 }
 0x2fd   : > { %v1833_v13 = vrot.slane %v1832_v30, 2 }
 0x2ff   : > { %v1834_v50 = vadd.f32 %v1833_v13, %v1832_v30 }
 0x301   : > { %v1835_v51 = vrot.slane %v1834_v50, 1 }
 0x303   : > { %v1836_v53 = vadd.f32 %v1835_v51, %v1834_v50  ;;  %1843 = sbr.rel (%p2106_p7) target bundleno = 921 (0x399), region = 60 }
 0x305   : > { %v1837_v25 = vadd.f32 %v1836_v53, %v1815_v40 }
 0x307   : > { %1839 = vst.msk [vmem:[%s3457_s20] sm:$0x1] %vm1838_vm9, %v1837_v25 }
 0x308   : > { %v1846_v56 = vld [vmem:[%s3534_s7] sm:$0xf] }
 0x309   : > { %v1853_v36 = vsel %vm824_vm2, %v1846_v56, 0  ;;  %v1848_v19 = vld [vmem:[%s3531_s4] sm:$0x1] }
 0x30a   : > { %1862 = vmatpush.bf16.msra.mxu0 %v1853_v36 }
 0x30e   : > { %v1844_v20 = vld [vmem:[%s3457_s20] sm:$0x1] }
 0x30f   : > { %v1845_v14 = vmul.f32 0.00390625, %v1844_v20 }
 0x311   : > { %v1847_v29 = vpack.c.bf16 %v1845_v14, %v1845_v14 }
 0x313   : > { %2107 = vmatmul.msk.bf16.vlgmr.msra.gmra.mxu0 %vm526_vm0, %v1847_v29 }
 0x390   : > { %v1864_v24 = vpop.f32.mrf.mxu0 }
 0x391   : > { %v1865_v42 = vadd.f32 %v1864_v24, %v1848_v19 }
 0x393   : > { %1868 = vst.msk [vmem:[%s3457_s20] sm:$0x1] %vm1838_vm9, %v1865_v42 }
 0x398   : > { %v1866_v34 = vpop.f32.mrf.mxu0 }
 0x399 PF: > { %s1892_s26 = scalar_lea.hbm %s3536_s9, %s2307_s13  ;;  %s1894_s29 = sshll.u32 %s3457_s20, 4  ;;  %s1895_s29 = int_to_ptr.vmem [resolvable:$true] %s1894_s29 }
 0x39a   : > { %s1896_s23 = sshll.u32 %s1892_s26, 4  ;;  %s1880_s27 = scalar_lea.sflag [#allocation3], %s453_s17  ;;  %s1897_s23 = int_to_ptr.hbm [resolvable:$true] %s1896_s23 }
 0x39b   : > { %s2239_s18 = sshra.s32 %s1897_s23, 4  ;;  %s2245_s0 = scalar_lea.hbm %s3536_s9, 2  ;;  %s2240_s18 = int_to_ptr.hbm [resolvable:$true] %s2239_s18 }
 0x39c   : > { %s2241_s24 = scalar_lea.hbm %s2240_s18, 1  ;;  %p2246_p12 = scmp.lt.s32.totalorder %s2240_s18, %s3536_s9 }
 0x39d   : > { %p2242_p8 = scmp.ne.s32.totalorder %s2240_s18, %s2241_s24  ;;  %p2247_p13 = scmp.lt.s32.totalorder %s2245_s0, %s2241_s24 }
 0x39f   : > { %p2243_p10 = pnand %p2242_p8, %p2425_p3  ;;  %p2248_p0 = por %p2247_p13, %p2246_p12 }
 0x3a1   : > { %p2244_p11 = pneg %p2243_p10 }
 0x3a3   : > { %p2249_p1 = pnand %p2248_p0, %p2244_p11 }
 0x3a5   : > { %2252 = shalt.err (!%p2249_p1)
}
 0x3a6   : > { %2121 = dma.vmem_to_hbm [thread:$0]  (%p2425_p3), %s1895_s29, 16, %s1897_s23, %s1880_s27  }
 0x3a7 PF: > { %p2127_p2 = scmp.ge.s32.totalorder %s2319_s16, 2  ;;  %s1921_s13 = sand.u32 1, %s2291_s30  }
 0x3a8   : > { %s1922_s17 = scalar_lea.sflag [#allocation3], %s1921_s13 }
 0x3a9   : > { %p2124_p4 = pnand %p2127_p2, %p2435_p9 }
 0x3ab   : > { %p2125_p5 = pneg %p2124_p4 }
 0x3ad   : > { %2286 = dma.done.wait (%p2125_p5), %s1922_s17, 16  }
 0x3ae   : > { %2288 = vsyncadd (%p2125_p5), %s1922_s17, 4294967280  ;;  %s23_s16 = sadd.s32 1, %s2319_s16   ;;  %s3625_s12 = sld [smem:[#allocation5_spill]] }
 0x3af   : > { %p20_p6 = scmp.ge.s32.totalorder %s23_s16, 10   ;;  %s3626_s13 = sld [smem:[#allocation6_spill]] }
 0x3b0   : > { %s3627_s14 = sld [smem:[#allocation7_spill]]  ;;  %s3629_s30 = smov %s2295_s10 }
 0x3b1   : > { %s3628_s15 = sld [smem:[#allocation8_spill]]  ;;  %s3630_s10 = smov %s2299_s11 }
 0x3b2   : > { %s3631_s11 = smov %s2443_s25  ;;  %22 = sbr.rel (!%p20_p6) target bundleno = 7 (0x7), region = 113 }
 0x3b7   :  { %1927 = vsyncpa [#allocation3], 1 }
 0x3b8   :  { %1929 = vsyncpa [#allocation3 + $0x1], 1 }

</bundles_post_ra>
